<compile_context>
chip_gen: v7x
topology: tpu7x:2x2x1
jax: 0.10.0
libtpu: 0.0.40
codegen_flags: <defaults>
</compile_context>

<pallas_src>
import math
import jax
import jax.numpy as jnp
from jax import lax
from jax.experimental import pallas as pl
from jax.experimental.pallas import tpu as pltpu


def make_decoder_layer_kernel(nhead: int, eps: float = 1e-5):
    """Kernel computing one full decoder layer for one batch element."""

    def kernel(tgt_ref, mem_ref,
               sa_wq, sa_bq, sa_wk, sa_bk, sa_wv, sa_bv, sa_wo, sa_bo,
               ca_wq, ca_bq, ca_wk, ca_bk, ca_wv, ca_bv, ca_wo, ca_bo,
               ff_w1, ff_b1, ff_w2, ff_b2,
               n1_g, n1_b, n2_g, n2_b, n3_g, n3_b,
               out_ref):
        E = tgt_ref.shape[-1]
        dh = E // nhead

        x = tgt_ref[0].astype(jnp.float32)     # (T, E), residual path kept in f32
        mem = mem_ref[0]                       # (S, E)

        def linear(a, w_ref, b_ref):
            # bf16 MXU inputs, f32 accumulation, f32 bias add.
            return jnp.dot(a.astype(jnp.bfloat16), w_ref[...],
                           preferred_element_type=jnp.float32) + b_ref[...]

        def split_heads(a):
            # (Tq, E) -> (nhead, Tq, dh), bf16 for the MXU.
            tq = a.shape[0]
            return jnp.swapaxes(a.reshape(tq, nhead, dh), 0, 1).astype(jnp.bfloat16)

        def mha(q_in, kv_in, wq, bq, wk, bk, wv, bv, wo, bo):
            # 1/sqrt(dh) is pre-folded into wq/bq in the wrapper.
            q = split_heads(linear(q_in, wq, bq))     # (H, Tq, dh)
            k = split_heads(linear(kv_in, wk, bk))    # (H, Tk, dh)
            v = split_heads(linear(kv_in, wv, bv))    # (H, Tk, dh)
            # Head-batched score / context matmuls (single MXU calls per block).
            s = jnp.einsum('hqd,hkd->hqk', q, k,
                           preferred_element_type=jnp.float32)       # (H, Tq, Tk)
            s = s - jnp.max(s, axis=-1, keepdims=True)
            p = jnp.exp(s)
            denom = jnp.sum(p, axis=-1, keepdims=True)
            p = p * pl.reciprocal(denom, approx=True)                # EUP reciprocal
            o = jnp.einsum('hqk,hkd->hqd', p.astype(jnp.bfloat16), v,
                           preferred_element_type=jnp.float32)       # (H, Tq, dh)
            tq = q_in.shape[0]
            attn = jnp.swapaxes(o, 0, 1).reshape(tq, E)              # re-pack heads
            return linear(attn, wo, bo)

        def layer_norm(a, g_ref, b_ref):
            mu = jnp.mean(a, axis=-1, keepdims=True)
            var = jnp.mean(jnp.square(a - mu), axis=-1, keepdims=True)
            return (a - mu) * lax.rsqrt(var + eps) * g_ref[...] + b_ref[...]

        # 1) self-attention block (dropout1 == identity)
        x = layer_norm(x + mha(x, x, sa_wq, sa_bq, sa_wk, sa_bk,
                               sa_wv, sa_bv, sa_wo, sa_bo), n1_g, n1_b)
        # 2) cross-attention block (dropout2 == identity)
        x = layer_norm(x + mha(x, mem, ca_wq, ca_bq, ca_wk, ca_bk,
                               ca_wv, ca_bv, ca_wo, ca_bo), n2_g, n2_b)
        # 3) feed-forward: linear2(dropout(relu(linear1(x)))) (dropouts == identity)
        h1 = jnp.maximum(linear(x, ff_w1, ff_b1), 0.0)
        y = linear(h1, ff_w2, ff_b2)
        x = layer_norm(x + y, n3_g, n3_b)

        out_ref[0] = x.astype(out_ref.dtype)

    return kernel


def init_params(key, E, dff):
    """Deterministic parameter init, shapes match the PyTorch module."""
    keys = jax.random.split(key, 16)
    params = {}
    i = 0

    def w(k, out_dim, in_dim):
        return jax.random.normal(k, (out_dim, in_dim), jnp.float32) * 0.02

    for prefix in ("sa", "ca"):                      # self- / cross-attention
        for nm in ("q", "k", "v", "o"):
            params[f"{prefix}_w{nm}"] = w(keys[i], E, E); i += 1
            params[f"{prefix}_b{nm}"] = jnp.zeros((E,), jnp.float32)
    params["ff_w1"] = w(keys[i], dff, E); i += 1     # Linear(E -> dff)
    params["ff_b1"] = jnp.zeros((dff,), jnp.float32)
    params["ff_w2"] = w(keys[i], E, dff); i += 1     # Linear(dff -> E)
    params["ff_b2"] = jnp.zeros((E,), jnp.float32)
    for n in ("n1", "n2", "n3"):                     # LayerNorm(E)
        params[f"{n}_g"] = jnp.ones((E,), jnp.float32)
        params[f"{n}_b"] = jnp.zeros((E,), jnp.float32)
    return params


def transformer_decoder_layer(tgt, memory, params, nhead):
    """tgt: [T, B, E], memory: [S, B, E]  ->  [T, B, E]"""
    T, B, E = tgt.shape
    S = memory.shape[0]
    dh = E // nhead
    scale = 1.0 / math.sqrt(dh)

    # batch-major for per-batch grid tiling (trailing block dims = full dims)
    tgt_b = jnp.transpose(tgt, (1, 0, 2))    # (B, T, E)
    mem_b = jnp.transpose(memory, (1, 0, 2)) # (B, S, E)

    def wt(name, pre=1.0):
        # PyTorch Linear weight [out, in] -> transposed [in, out], bf16 for MXU.
        return jnp.transpose(params[name] * pre).astype(jnp.bfloat16)

    def vec(name, pre=1.0):
        # 1-D param -> (1, dim), kept in f32 (bias add / LN done in f32).
        return (params[name] * pre).reshape(1, -1).astype(jnp.float32)

    ordered = []
    for prefix in ("sa", "ca"):
        for nm in ("q", "k", "v", "o"):
            pre = scale if nm == "q" else 1.0        # fold 1/sqrt(dh) into Q proj
            ordered.append(wt(f"{prefix}_w{nm}", pre))
            ordered.append(vec(f"{prefix}_b{nm}", pre))
    ordered += [wt("ff_w1"), vec("ff_b1"), wt("ff_w2"), vec("ff_b2")]
    for n in ("n1", "n2", "n3"):
        ordered += [vec(f"{n}_g"), vec(f"{n}_b")]

    param_specs = [pl.BlockSpec(p.shape, lambda b: (0, 0)) for p in ordered]
    in_specs = [
        pl.BlockSpec((1, T, E), lambda b: (b, 0, 0)),
        pl.BlockSpec((1, S, E), lambda b: (b, 0, 0)),
    ] + param_specs
    out_spec = pl.BlockSpec((1, T, E), lambda b: (b, 0, 0))

    # Explicit VMEM budget: resident weights (+double-buffer headroom) + I/O blocks.
    param_bytes = sum(int(p.size) * p.dtype.itemsize for p in ordered)
    io_bytes = (2 * T * E + 2 * S * E + 2 * T * E) * 4   # double-buffered f32 blocks
    vmem_limit = int(min(100 * 2 ** 20,
                         max(32 * 2 ** 20, 2 * param_bytes + io_bytes + (8 << 20))))

    out = pl.pallas_call(
        make_decoder_layer_kernel(nhead),
        grid=(B,),
        in_specs=in_specs,
        out_specs=out_spec,
        out_shape=jax.ShapeDtypeStruct((B, T, E), tgt.dtype),
        compiler_params=pltpu.CompilerParams(
            dimension_semantics=("parallel",),
            vmem_limit_bytes=vmem_limit),
    )(tgt_b, mem_b, *ordered)

    return jnp.transpose(out, (1, 0, 2))     # back to [T, B, E]


if __name__ == "__main__":
    T, S, B, E, H, F = 8, 16, 2, 32, 4, 64   # tgt_seq, src_seq, batch, emb, heads, ffn
    key = jax.random.PRNGKey(0)
    k1, k2, k3 = jax.random.split(key, 3)
    tgt = jax.random.normal(k1, (T, B, E), jnp.float32)
    memory = jax.random.normal(k2, (S, B, E), jnp.float32)
    params = init_params(k3, E, F)

    out = transformer_decoder_layer(tgt, memory, params, H)
    out = jax.block_until_ready(out)
    assert out.shape == (T, B, E)
    assert bool(jnp.all(jnp.isfinite(out)))
    print("KERNEL_OK")
</pallas_src>

<mosaic_0001>
module attributes {stable_mosaic.version = 11 : i64} {
  func.func @kernel(%arg0: i32, %arg1: memref<1x8x32xf32, #tpu.memory_space<vmem>>, %arg2: memref<1x16x32xf32, #tpu.memory_space<vmem>>, %arg3: memref<32x32xbf16, #tpu.memory_space<vmem>>, %arg4: memref<1x32xf32, #tpu.memory_space<vmem>>, %arg5: memref<32x32xbf16, #tpu.memory_space<vmem>>, %arg6: memref<1x32xf32, #tpu.memory_space<vmem>>, %arg7: memref<32x32xbf16, #tpu.memory_space<vmem>>, %arg8: memref<1x32xf32, #tpu.memory_space<vmem>>, %arg9: memref<32x32xbf16, #tpu.memory_space<vmem>>, %arg10: memref<1x32xf32, #tpu.memory_space<vmem>>, %arg11: memref<32x32xbf16, #tpu.memory_space<vmem>>, %arg12: memref<1x32xf32, #tpu.memory_space<vmem>>, %arg13: memref<32x32xbf16, #tpu.memory_space<vmem>>, %arg14: memref<1x32xf32, #tpu.memory_space<vmem>>, %arg15: memref<32x32xbf16, #tpu.memory_space<vmem>>, %arg16: memref<1x32xf32, #tpu.memory_space<vmem>>, %arg17: memref<32x32xbf16, #tpu.memory_space<vmem>>, %arg18: memref<1x32xf32, #tpu.memory_space<vmem>>, %arg19: memref<32x64xbf16, #tpu.memory_space<vmem>>, %arg20: memref<1x64xf32, #tpu.memory_space<vmem>>, %arg21: memref<64x32xbf16, #tpu.memory_space<vmem>>, %arg22: memref<1x32xf32, #tpu.memory_space<vmem>>, %arg23: memref<1x32xf32, #tpu.memory_space<vmem>>, %arg24: memref<1x32xf32, #tpu.memory_space<vmem>>, %arg25: memref<1x32xf32, #tpu.memory_space<vmem>>, %arg26: memref<1x32xf32, #tpu.memory_space<vmem>>, %arg27: memref<1x32xf32, #tpu.memory_space<vmem>>, %arg28: memref<1x32xf32, #tpu.memory_space<vmem>>, %arg29: memref<1x8x32xf32, #tpu.memory_space<vmem>>) attributes {dimension_semantics = [#tpu.dimension_semantics<parallel>], iteration_bounds = array<i64: 2>, scalar_prefetch = 0 : i64, scratch_operands = 0 : i64, tpu.core_type = #tpu.core_type<tc>, window_params = [{transform_indices = @transform_0, window_bounds = array<i64: 1, 8, 32>}, {transform_indices = @transform_1, window_bounds = array<i64: 1, 16, 32>}, {pipeline_mode = #tpu.pipeline_mode<synchronous>, transform_indices = @transform_2, window_bounds = array<i64: 32, 32>}, {pipeline_mode = #tpu.pipeline_mode<synchronous>, transform_indices = @transform_3, window_bounds = array<i64: 1, 32>}, {pipeline_mode = #tpu.pipeline_mode<synchronous>, transform_indices = @transform_4, window_bounds = array<i64: 32, 32>}, {pipeline_mode = #tpu.pipeline_mode<synchronous>, transform_indices = @transform_5, window_bounds = array<i64: 1, 32>}, {pipeline_mode = #tpu.pipeline_mode<synchronous>, transform_indices = @transform_6, window_bounds = array<i64: 32, 32>}, {pipeline_mode = #tpu.pipeline_mode<synchronous>, transform_indices = @transform_7, window_bounds = array<i64: 1, 32>}, {pipeline_mode = #tpu.pipeline_mode<synchronous>, transform_indices = @transform_8, window_bounds = array<i64: 32, 32>}, {pipeline_mode = #tpu.pipeline_mode<synchronous>, transform_indices = @transform_9, window_bounds = array<i64: 1, 32>}, {pipeline_mode = #tpu.pipeline_mode<synchronous>, transform_indices = @transform_10, window_bounds = array<i64: 32, 32>}, {pipeline_mode = #tpu.pipeline_mode<synchronous>, transform_indices = @transform_11, window_bounds = array<i64: 1, 32>}, {pipeline_mode = #tpu.pipeline_mode<synchronous>, transform_indices = @transform_12, window_bounds = array<i64: 32, 32>}, {pipeline_mode = #tpu.pipeline_mode<synchronous>, transform_indices = @transform_13, window_bounds = array<i64: 1, 32>}, {pipeline_mode = #tpu.pipeline_mode<synchronous>, transform_indices = @transform_14, window_bounds = array<i64: 32, 32>}, {pipeline_mode = #tpu.pipeline_mode<synchronous>, transform_indices = @transform_15, window_bounds = array<i64: 1, 32>}, {pipeline_mode = #tpu.pipeline_mode<synchronous>, transform_indices = @transform_16, window_bounds = array<i64: 32, 32>}, {pipeline_mode = #tpu.pipeline_mode<synchronous>, transform_indices = @transform_17, window_bounds = array<i64: 1, 32>}, {pipeline_mode = #tpu.pipeline_mode<synchronous>, transform_indices = @transform_18, window_bounds = array<i64: 32, 64>}, {pipeline_mode = #tpu.pipeline_mode<synchronous>, transform_indices = @transform_19, window_bounds = array<i64: 1, 64>}, {pipeline_mode = #tpu.pipeline_mode<synchronous>, transform_indices = @transform_20, window_bounds = array<i64: 64, 32>}, {pipeline_mode = #tpu.pipeline_mode<synchronous>, transform_indices = @transform_21, window_bounds = array<i64: 1, 32>}, {pipeline_mode = #tpu.pipeline_mode<synchronous>, transform_indices = @transform_22, window_bounds = array<i64: 1, 32>}, {pipeline_mode = #tpu.pipeline_mode<synchronous>, transform_indices = @transform_23, window_bounds = array<i64: 1, 32>}, {pipeline_mode = #tpu.pipeline_mode<synchronous>, transform_indices = @transform_24, window_bounds = array<i64: 1, 32>}, {pipeline_mode = #tpu.pipeline_mode<synchronous>, transform_indices = @transform_25, window_bounds = array<i64: 1, 32>}, {pipeline_mode = #tpu.pipeline_mode<synchronous>, transform_indices = @transform_26, window_bounds = array<i64: 1, 32>}, {pipeline_mode = #tpu.pipeline_mode<synchronous>, transform_indices = @transform_27, window_bounds = array<i64: 1, 32>}, {transform_indices = @transform_28, window_bounds = array<i64: 1, 8, 32>}]} {
    %c0 = arith.constant 0 : index
    %c0_0 = arith.constant 0 : index
    %c0_1 = arith.constant 0 : index
    %0 = vector.load %arg1[%c0, %c0_0, %c0_1] : memref<1x8x32xf32, #tpu.memory_space<vmem>>, vector<1x8x32xf32>
    %1 = vector.shape_cast %0 : vector<1x8x32xf32> to vector<8x32xf32>
    %c0_2 = arith.constant 0 : index
    %c0_3 = arith.constant 0 : index
    %c0_4 = arith.constant 0 : index
    %2 = vector.load %arg2[%c0_2, %c0_3, %c0_4] : memref<1x16x32xf32, #tpu.memory_space<vmem>>, vector<1x16x32xf32>
    %3 = vector.shape_cast %2 : vector<1x16x32xf32> to vector<16x32xf32>
    %4 = arith.truncf %1 : vector<8x32xf32> to vector<8x32xbf16>
    %c0_5 = arith.constant 0 : index
    %c0_6 = arith.constant 0 : index
    %5 = vector.load %arg3[%c0_5, %c0_6] : memref<32x32xbf16, #tpu.memory_space<vmem>>, vector<32x32xbf16>
    %cst = arith.constant dense<0.000000e+00> : vector<8x32xf32>
    %6 = tpu.matmul %4, %5, %cst {dimension_numbers = #tpu.dot_dimension_numbers<[1], [0], [0], [1], [0, 0, 1, 1], [], []>} : vector<8x32xbf16>, vector<32x32xbf16>, vector<8x32xf32> -> vector<8x32xf32>
    %c0_7 = arith.constant 0 : index
    %c0_8 = arith.constant 0 : index
    %7 = vector.load %arg4[%c0_7, %c0_8] : memref<1x32xf32, #tpu.memory_space<vmem>>, vector<1x32xf32>
    %8 = vector.broadcast %7 : vector<1x32xf32> to vector<8x32xf32>
    %9 = arith.addf %6, %8 : vector<8x32xf32>
    %10 = vector.shape_cast %9 : vector<8x32xf32> to vector<8x4x8xf32>
    %11 = tpu.transpose %10, [1, 0, 2] : vector<8x4x8xf32> -> vector<4x8x8xf32>
    %12 = arith.truncf %11 : vector<4x8x8xf32> to vector<4x8x8xbf16>
    %13 = arith.truncf %1 : vector<8x32xf32> to vector<8x32xbf16>
    %c0_9 = arith.constant 0 : index
    %c0_10 = arith.constant 0 : index
    %14 = vector.load %arg5[%c0_9, %c0_10] : memref<32x32xbf16, #tpu.memory_space<vmem>>, vector<32x32xbf16>
    %cst_11 = arith.constant dense<0.000000e+00> : vector<8x32xf32>
    %15 = tpu.matmul %13, %14, %cst_11 {dimension_numbers = #tpu.dot_dimension_numbers<[1], [0], [0], [1], [0, 0, 1, 1], [], []>} : vector<8x32xbf16>, vector<32x32xbf16>, vector<8x32xf32> -> vector<8x32xf32>
    %c0_12 = arith.constant 0 : index
    %c0_13 = arith.constant 0 : index
    %16 = vector.load %arg6[%c0_12, %c0_13] : memref<1x32xf32, #tpu.memory_space<vmem>>, vector<1x32xf32>
    %17 = vector.broadcast %16 : vector<1x32xf32> to vector<8x32xf32>
    %18 = arith.addf %15, %17 : vector<8x32xf32>
    %19 = vector.shape_cast %18 : vector<8x32xf32> to vector<8x4x8xf32>
    %20 = tpu.transpose %19, [1, 0, 2] : vector<8x4x8xf32> -> vector<4x8x8xf32>
    %21 = arith.truncf %20 : vector<4x8x8xf32> to vector<4x8x8xbf16>
    %22 = arith.truncf %1 : vector<8x32xf32> to vector<8x32xbf16>
    %c0_14 = arith.constant 0 : index
    %c0_15 = arith.constant 0 : index
    %23 = vector.load %arg7[%c0_14, %c0_15] : memref<32x32xbf16, #tpu.memory_space<vmem>>, vector<32x32xbf16>
    %cst_16 = arith.constant dense<0.000000e+00> : vector<8x32xf32>
    %24 = tpu.matmul %22, %23, %cst_16 {dimension_numbers = #tpu.dot_dimension_numbers<[1], [0], [0], [1], [0, 0, 1, 1], [], []>} : vector<8x32xbf16>, vector<32x32xbf16>, vector<8x32xf32> -> vector<8x32xf32>
    %c0_17 = arith.constant 0 : index
    %c0_18 = arith.constant 0 : index
    %25 = vector.load %arg8[%c0_17, %c0_18] : memref<1x32xf32, #tpu.memory_space<vmem>>, vector<1x32xf32>
    %26 = vector.broadcast %25 : vector<1x32xf32> to vector<8x32xf32>
    %27 = arith.addf %24, %26 : vector<8x32xf32>
    %28 = vector.shape_cast %27 : vector<8x32xf32> to vector<8x4x8xf32>
    %29 = tpu.transpose %28, [1, 0, 2] : vector<8x4x8xf32> -> vector<4x8x8xf32>
    %30 = arith.truncf %29 : vector<4x8x8xf32> to vector<4x8x8xbf16>
    "tpu.trace_start"() <{level = 10 : i32, message = "hqd,hkd->hqk"}> : () -> ()
    %cst_19 = arith.constant dense<0.000000e+00> : vector<4x8x8xf32>
    %31 = tpu.matmul %12, %21, %cst_19 {dimension_numbers = #tpu.dot_dimension_numbers<[2], [2], [1], [1], [0, 0, 0, 1, 1, 1], [0], [0]>} : vector<4x8x8xbf16>, vector<4x8x8xbf16>, vector<4x8x8xf32> -> vector<4x8x8xf32>
    "tpu.trace_stop"() : () -> ()
    %cst_20 = arith.constant dense<0xFF800000> : vector<4x8xf32>
    %32 = vector.multi_reduction <maximumf>, %31, %cst_20 [2] : vector<4x8x8xf32> to vector<4x8xf32>
    %33 = vector.shape_cast %32 : vector<4x8xf32> to vector<4x8x1xf32>
    %34 = vector.broadcast %33 : vector<4x8x1xf32> to vector<4x8x8xf32>
    %35 = arith.subf %31, %34 : vector<4x8x8xf32>
    %36 = math.exp %35 : vector<4x8x8xf32>
    %cst_21 = arith.constant dense<0.000000e+00> : vector<4x8xf32>
    %37 = vector.multi_reduction <add>, %36, %cst_21 [2] : vector<4x8x8xf32> to vector<4x8xf32>
    %38 = vector.shape_cast %37 : vector<4x8xf32> to vector<4x8x1xf32>
    %39 = tpu.reciprocal %38 {approx = true} : vector<4x8x1xf32> -> vector<4x8x1xf32>
    %40 = vector.broadcast %39 : vector<4x8x1xf32> to vector<4x8x8xf32>
    %41 = arith.mulf %36, %40 : vector<4x8x8xf32>
    %42 = arith.truncf %41 : vector<4x8x8xf32> to vector<4x8x8xbf16>
    "tpu.trace_start"() <{level = 10 : i32, message = "hqk,hkd->hqd"}> : () -> ()
    %cst_22 = arith.constant dense<0.000000e+00> : vector<4x8x8xf32>
    %43 = tpu.matmul %42, %30, %cst_22 {dimension_numbers = #tpu.dot_dimension_numbers<[2], [1], [1], [2], [0, 0, 0, 1, 1, 2], [0], [0]>} : vector<4x8x8xbf16>, vector<4x8x8xbf16>, vector<4x8x8xf32> -> vector<4x8x8xf32>
    "tpu.trace_stop"() : () -> ()
    %44 = tpu.transpose %43, [1, 0, 2] : vector<4x8x8xf32> -> vector<8x4x8xf32>
    %45 = vector.shape_cast %44 : vector<8x4x8xf32> to vector<8x32xf32>
    %46 = arith.truncf %45 : vector<8x32xf32> to vector<8x32xbf16>
    %c0_23 = arith.constant 0 : index
    %c0_24 = arith.constant 0 : index
    %47 = vector.load %arg9[%c0_23, %c0_24] : memref<32x32xbf16, #tpu.memory_space<vmem>>, vector<32x32xbf16>
    %cst_25 = arith.constant dense<0.000000e+00> : vector<8x32xf32>
    %48 = tpu.matmul %46, %47, %cst_25 {dimension_numbers = #tpu.dot_dimension_numbers<[1], [0], [0], [1], [0, 0, 1, 1], [], []>} : vector<8x32xbf16>, vector<32x32xbf16>, vector<8x32xf32> -> vector<8x32xf32>
    %c0_26 = arith.constant 0 : index
    %c0_27 = arith.constant 0 : index
    %49 = vector.load %arg10[%c0_26, %c0_27] : memref<1x32xf32, #tpu.memory_space<vmem>>, vector<1x32xf32>
    %50 = vector.broadcast %49 : vector<1x32xf32> to vector<8x32xf32>
    %51 = arith.addf %48, %50 : vector<8x32xf32>
    %52 = arith.addf %1, %51 : vector<8x32xf32>
    %cst_28 = arith.constant dense<0.000000e+00> : vector<8xf32>
    %53 = vector.multi_reduction <add>, %52, %cst_28 [1] : vector<8x32xf32> to vector<8xf32>
    %54 = vector.shape_cast %53 : vector<8xf32> to vector<8x1xf32>
    %cst_29 = arith.constant 3.200000e+01 : f32
    %55 = vector.broadcast %cst_29 : f32 to vector<8x1xf32>
    %56 = arith.divf %54, %55 : vector<8x1xf32>
    %57 = vector.broadcast %56 : vector<8x1xf32> to vector<8x32xf32>
    %58 = arith.subf %52, %57 : vector<8x32xf32>
    %59 = arith.mulf %58, %58 : vector<8x32xf32>
    %cst_30 = arith.constant dense<0.000000e+00> : vector<8xf32>
    %60 = vector.multi_reduction <add>, %59, %cst_30 [1] : vector<8x32xf32> to vector<8xf32>
    %61 = vector.shape_cast %60 : vector<8xf32> to vector<8x1xf32>
    %cst_31 = arith.constant 3.200000e+01 : f32
    %62 = vector.broadcast %cst_31 : f32 to vector<8x1xf32>
    %63 = arith.divf %61, %62 : vector<8x1xf32>
    %64 = vector.broadcast %56 : vector<8x1xf32> to vector<8x32xf32>
    %65 = arith.subf %52, %64 : vector<8x32xf32>
    %cst_32 = arith.constant 9.99999974E-6 : f32
    %66 = vector.broadcast %cst_32 : f32 to vector<8x1xf32>
    %67 = arith.addf %63, %66 : vector<8x1xf32>
    %68 = math.rsqrt %67 : vector<8x1xf32>
    %69 = vector.broadcast %68 : vector<8x1xf32> to vector<8x32xf32>
    %70 = arith.mulf %65, %69 : vector<8x32xf32>
    %c0_33 = arith.constant 0 : index
    %c0_34 = arith.constant 0 : index
    %71 = vector.load %arg23[%c0_33, %c0_34] : memref<1x32xf32, #tpu.memory_space<vmem>>, vector<1x32xf32>
    %72 = vector.broadcast %71 : vector<1x32xf32> to vector<8x32xf32>
    %73 = arith.mulf %70, %72 : vector<8x32xf32>
    %c0_35 = arith.constant 0 : index
    %c0_36 = arith.constant 0 : index
    %74 = vector.load %arg24[%c0_35, %c0_36] : memref<1x32xf32, #tpu.memory_space<vmem>>, vector<1x32xf32>
    %75 = vector.broadcast %74 : vector<1x32xf32> to vector<8x32xf32>
    %76 = arith.addf %73, %75 : vector<8x32xf32>
    %77 = arith.truncf %76 : vector<8x32xf32> to vector<8x32xbf16>
    %c0_37 = arith.constant 0 : index
    %c0_38 = arith.constant 0 : index
    %78 = vector.load %arg11[%c0_37, %c0_38] : memref<32x32xbf16, #tpu.memory_space<vmem>>, vector<32x32xbf16>
    %cst_39 = arith.constant dense<0.000000e+00> : vector<8x32xf32>
    %79 = tpu.matmul %77, %78, %cst_39 {dimension_numbers = #tpu.dot_dimension_numbers<[1], [0], [0], [1], [0, 0, 1, 1], [], []>} : vector<8x32xbf16>, vector<32x32xbf16>, vector<8x32xf32> -> vector<8x32xf32>
    %c0_40 = arith.constant 0 : index
    %c0_41 = arith.constant 0 : index
    %80 = vector.load %arg12[%c0_40, %c0_41] : memref<1x32xf32, #tpu.memory_space<vmem>>, vector<1x32xf32>
    %81 = vector.broadcast %80 : vector<1x32xf32> to vector<8x32xf32>
    %82 = arith.addf %79, %81 : vector<8x32xf32>
    %83 = vector.shape_cast %82 : vector<8x32xf32> to vector<8x4x8xf32>
    %84 = tpu.transpose %83, [1, 0, 2] : vector<8x4x8xf32> -> vector<4x8x8xf32>
    %85 = arith.truncf %84 : vector<4x8x8xf32> to vector<4x8x8xbf16>
    %86 = arith.truncf %3 : vector<16x32xf32> to vector<16x32xbf16>
    %c0_42 = arith.constant 0 : index
    %c0_43 = arith.constant 0 : index
    %87 = vector.load %arg13[%c0_42, %c0_43] : memref<32x32xbf16, #tpu.memory_space<vmem>>, vector<32x32xbf16>
    %cst_44 = arith.constant dense<0.000000e+00> : vector<16x32xf32>
    %88 = tpu.matmul %86, %87, %cst_44 {dimension_numbers = #tpu.dot_dimension_numbers<[1], [0], [0], [1], [0, 0, 1, 1], [], []>} : vector<16x32xbf16>, vector<32x32xbf16>, vector<16x32xf32> -> vector<16x32xf32>
    %c0_45 = arith.constant 0 : index
    %c0_46 = arith.constant 0 : index
    %89 = vector.load %arg14[%c0_45, %c0_46] : memref<1x32xf32, #tpu.memory_space<vmem>>, vector<1x32xf32>
    %90 = vector.broadcast %89 : vector<1x32xf32> to vector<16x32xf32>
    %91 = arith.addf %88, %90 : vector<16x32xf32>
    %92 = vector.shape_cast %91 : vector<16x32xf32> to vector<16x4x8xf32>
    %93 = tpu.transpose %92, [1, 0, 2] : vector<16x4x8xf32> -> vector<4x16x8xf32>
    %94 = arith.truncf %93 : vector<4x16x8xf32> to vector<4x16x8xbf16>
    %95 = arith.truncf %3 : vector<16x32xf32> to vector<16x32xbf16>
    %c0_47 = arith.constant 0 : index
    %c0_48 = arith.constant 0 : index
    %96 = vector.load %arg15[%c0_47, %c0_48] : memref<32x32xbf16, #tpu.memory_space<vmem>>, vector<32x32xbf16>
    %cst_49 = arith.constant dense<0.000000e+00> : vector<16x32xf32>
    %97 = tpu.matmul %95, %96, %cst_49 {dimension_numbers = #tpu.dot_dimension_numbers<[1], [0], [0], [1], [0, 0, 1, 1], [], []>} : vector<16x32xbf16>, vector<32x32xbf16>, vector<16x32xf32> -> vector<16x32xf32>
    %c0_50 = arith.constant 0 : index
    %c0_51 = arith.constant 0 : index
    %98 = vector.load %arg16[%c0_50, %c0_51] : memref<1x32xf32, #tpu.memory_space<vmem>>, vector<1x32xf32>
    %99 = vector.broadcast %98 : vector<1x32xf32> to vector<16x32xf32>
    %100 = arith.addf %97, %99 : vector<16x32xf32>
    %101 = vector.shape_cast %100 : vector<16x32xf32> to vector<16x4x8xf32>
    %102 = tpu.transpose %101, [1, 0, 2] : vector<16x4x8xf32> -> vector<4x16x8xf32>
    %103 = arith.truncf %102 : vector<4x16x8xf32> to vector<4x16x8xbf16>
    "tpu.trace_start"() <{level = 10 : i32, message = "hqd,hkd->hqk"}> : () -> ()
    %cst_52 = arith.constant dense<0.000000e+00> : vector<4x8x16xf32>
    %104 = tpu.matmul %85, %94, %cst_52 {dimension_numbers = #tpu.dot_dimension_numbers<[2], [2], [1], [1], [0, 0, 0, 1, 1, 1], [0], [0]>} : vector<4x8x8xbf16>, vector<4x16x8xbf16>, vector<4x8x16xf32> -> vector<4x8x16xf32>
    "tpu.trace_stop"() : () -> ()
    %cst_53 = arith.constant dense<0xFF800000> : vector<4x8xf32>
    %105 = vector.multi_reduction <maximumf>, %104, %cst_53 [2] : vector<4x8x16xf32> to vector<4x8xf32>
    %106 = vector.shape_cast %105 : vector<4x8xf32> to vector<4x8x1xf32>
    %107 = vector.broadcast %106 : vector<4x8x1xf32> to vector<4x8x16xf32>
    %108 = arith.subf %104, %107 : vector<4x8x16xf32>
    %109 = math.exp %108 : vector<4x8x16xf32>
    %cst_54 = arith.constant dense<0.000000e+00> : vector<4x8xf32>
    %110 = vector.multi_reduction <add>, %109, %cst_54 [2] : vector<4x8x16xf32> to vector<4x8xf32>
    %111 = vector.shape_cast %110 : vector<4x8xf32> to vector<4x8x1xf32>
    %112 = tpu.reciprocal %111 {approx = true} : vector<4x8x1xf32> -> vector<4x8x1xf32>
    %113 = vector.broadcast %112 : vector<4x8x1xf32> to vector<4x8x16xf32>
    %114 = arith.mulf %109, %113 : vector<4x8x16xf32>
    %115 = arith.truncf %114 : vector<4x8x16xf32> to vector<4x8x16xbf16>
    "tpu.trace_start"() <{level = 10 : i32, message = "hqk,hkd->hqd"}> : () -> ()
    %cst_55 = arith.constant dense<0.000000e+00> : vector<4x8x8xf32>
    %116 = tpu.matmul %115, %103, %cst_55 {dimension_numbers = #tpu.dot_dimension_numbers<[2], [1], [1], [2], [0, 0, 0, 1, 1, 2], [0], [0]>} : vector<4x8x16xbf16>, vector<4x16x8xbf16>, vector<4x8x8xf32> -> vector<4x8x8xf32>
    "tpu.trace_stop"() : () -> ()
    %117 = tpu.transpose %116, [1, 0, 2] : vector<4x8x8xf32> -> vector<8x4x8xf32>
    %118 = vector.shape_cast %117 : vector<8x4x8xf32> to vector<8x32xf32>
    %119 = arith.truncf %118 : vector<8x32xf32> to vector<8x32xbf16>
    %c0_56 = arith.constant 0 : index
    %c0_57 = arith.constant 0 : index
    %120 = vector.load %arg17[%c0_56, %c0_57] : memref<32x32xbf16, #tpu.memory_space<vmem>>, vector<32x32xbf16>
    %cst_58 = arith.constant dense<0.000000e+00> : vector<8x32xf32>
    %121 = tpu.matmul %119, %120, %cst_58 {dimension_numbers = #tpu.dot_dimension_numbers<[1], [0], [0], [1], [0, 0, 1, 1], [], []>} : vector<8x32xbf16>, vector<32x32xbf16>, vector<8x32xf32> -> vector<8x32xf32>
    %c0_59 = arith.constant 0 : index
    %c0_60 = arith.constant 0 : index
    %122 = vector.load %arg18[%c0_59, %c0_60] : memref<1x32xf32, #tpu.memory_space<vmem>>, vector<1x32xf32>
    %123 = vector.broadcast %122 : vector<1x32xf32> to vector<8x32xf32>
    %124 = arith.addf %121, %123 : vector<8x32xf32>
    %125 = arith.addf %76, %124 : vector<8x32xf32>
    %cst_61 = arith.constant dense<0.000000e+00> : vector<8xf32>
    %126 = vector.multi_reduction <add>, %125, %cst_61 [1] : vector<8x32xf32> to vector<8xf32>
    %127 = vector.shape_cast %126 : vector<8xf32> to vector<8x1xf32>
    %cst_62 = arith.constant 3.200000e+01 : f32
    %128 = vector.broadcast %cst_62 : f32 to vector<8x1xf32>
    %129 = arith.divf %127, %128 : vector<8x1xf32>
    %130 = vector.broadcast %129 : vector<8x1xf32> to vector<8x32xf32>
    %131 = arith.subf %125, %130 : vector<8x32xf32>
    %132 = arith.mulf %131, %131 : vector<8x32xf32>
    %cst_63 = arith.constant dense<0.000000e+00> : vector<8xf32>
    %133 = vector.multi_reduction <add>, %132, %cst_63 [1] : vector<8x32xf32> to vector<8xf32>
    %134 = vector.shape_cast %133 : vector<8xf32> to vector<8x1xf32>
    %cst_64 = arith.constant 3.200000e+01 : f32
    %135 = vector.broadcast %cst_64 : f32 to vector<8x1xf32>
    %136 = arith.divf %134, %135 : vector<8x1xf32>
    %137 = vector.broadcast %129 : vector<8x1xf32> to vector<8x32xf32>
    %138 = arith.subf %125, %137 : vector<8x32xf32>
    %cst_65 = arith.constant 9.99999974E-6 : f32
    %139 = vector.broadcast %cst_65 : f32 to vector<8x1xf32>
    %140 = arith.addf %136, %139 : vector<8x1xf32>
    %141 = math.rsqrt %140 : vector<8x1xf32>
    %142 = vector.broadcast %141 : vector<8x1xf32> to vector<8x32xf32>
    %143 = arith.mulf %138, %142 : vector<8x32xf32>
    %c0_66 = arith.constant 0 : index
    %c0_67 = arith.constant 0 : index
    %144 = vector.load %arg25[%c0_66, %c0_67] : memref<1x32xf32, #tpu.memory_space<vmem>>, vector<1x32xf32>
    %145 = vector.broadcast %144 : vector<1x32xf32> to vector<8x32xf32>
    %146 = arith.mulf %143, %145 : vector<8x32xf32>
    %c0_68 = arith.constant 0 : index
    %c0_69 = arith.constant 0 : index
    %147 = vector.load %arg26[%c0_68, %c0_69] : memref<1x32xf32, #tpu.memory_space<vmem>>, vector<1x32xf32>
    %148 = vector.broadcast %147 : vector<1x32xf32> to vector<8x32xf32>
    %149 = arith.addf %146, %148 : vector<8x32xf32>
    %150 = arith.truncf %149 : vector<8x32xf32> to vector<8x32xbf16>
    %c0_70 = arith.constant 0 : index
    %c0_71 = arith.constant 0 : index
    %151 = vector.load %arg19[%c0_70, %c0_71] : memref<32x64xbf16, #tpu.memory_space<vmem>>, vector<32x64xbf16>
    %cst_72 = arith.constant dense<0.000000e+00> : vector<8x64xf32>
    %152 = tpu.matmul %150, %151, %cst_72 {dimension_numbers = #tpu.dot_dimension_numbers<[1], [0], [0], [1], [0, 0, 1, 1], [], []>} : vector<8x32xbf16>, vector<32x64xbf16>, vector<8x64xf32> -> vector<8x64xf32>
    %c0_73 = arith.constant 0 : index
    %c0_74 = arith.constant 0 : index
    %153 = vector.load %arg20[%c0_73, %c0_74] : memref<1x64xf32, #tpu.memory_space<vmem>>, vector<1x64xf32>
    %154 = vector.broadcast %153 : vector<1x64xf32> to vector<8x64xf32>
    %155 = arith.addf %152, %154 : vector<8x64xf32>
    %cst_75 = arith.constant 0.000000e+00 : f32
    %156 = vector.broadcast %cst_75 : f32 to vector<8x64xf32>
    %157 = arith.maximumf %155, %156 : vector<8x64xf32>
    %158 = arith.truncf %157 : vector<8x64xf32> to vector<8x64xbf16>
    %c0_76 = arith.constant 0 : index
    %c0_77 = arith.constant 0 : index
    %159 = vector.load %arg21[%c0_76, %c0_77] : memref<64x32xbf16, #tpu.memory_space<vmem>>, vector<64x32xbf16>
    %cst_78 = arith.constant dense<0.000000e+00> : vector<8x32xf32>
    %160 = tpu.matmul %158, %159, %cst_78 {dimension_numbers = #tpu.dot_dimension_numbers<[1], [0], [0], [1], [0, 0, 1, 1], [], []>} : vector<8x64xbf16>, vector<64x32xbf16>, vector<8x32xf32> -> vector<8x32xf32>
    %c0_79 = arith.constant 0 : index
    %c0_80 = arith.constant 0 : index
    %161 = vector.load %arg22[%c0_79, %c0_80] : memref<1x32xf32, #tpu.memory_space<vmem>>, vector<1x32xf32>
    %162 = vector.broadcast %161 : vector<1x32xf32> to vector<8x32xf32>
    %163 = arith.addf %160, %162 : vector<8x32xf32>
    %164 = arith.addf %149, %163 : vector<8x32xf32>
    %cst_81 = arith.constant dense<0.000000e+00> : vector<8xf32>
    %165 = vector.multi_reduction <add>, %164, %cst_81 [1] : vector<8x32xf32> to vector<8xf32>
    %166 = vector.shape_cast %165 : vector<8xf32> to vector<8x1xf32>
    %cst_82 = arith.constant 3.200000e+01 : f32
    %167 = vector.broadcast %cst_82 : f32 to vector<8x1xf32>
    %168 = arith.divf %166, %167 : vector<8x1xf32>
    %169 = vector.broadcast %168 : vector<8x1xf32> to vector<8x32xf32>
    %170 = arith.subf %164, %169 : vector<8x32xf32>
    %171 = arith.mulf %170, %170 : vector<8x32xf32>
    %cst_83 = arith.constant dense<0.000000e+00> : vector<8xf32>
    %172 = vector.multi_reduction <add>, %171, %cst_83 [1] : vector<8x32xf32> to vector<8xf32>
    %173 = vector.shape_cast %172 : vector<8xf32> to vector<8x1xf32>
    %cst_84 = arith.constant 3.200000e+01 : f32
    %174 = vector.broadcast %cst_84 : f32 to vector<8x1xf32>
    %175 = arith.divf %173, %174 : vector<8x1xf32>
    %176 = vector.broadcast %168 : vector<8x1xf32> to vector<8x32xf32>
    %177 = arith.subf %164, %176 : vector<8x32xf32>
    %cst_85 = arith.constant 9.99999974E-6 : f32
    %178 = vector.broadcast %cst_85 : f32 to vector<8x1xf32>
    %179 = arith.addf %175, %178 : vector<8x1xf32>
    %180 = math.rsqrt %179 : vector<8x1xf32>
    %181 = vector.broadcast %180 : vector<8x1xf32> to vector<8x32xf32>
    %182 = arith.mulf %177, %181 : vector<8x32xf32>
    %c0_86 = arith.constant 0 : index
    %c0_87 = arith.constant 0 : index
    %183 = vector.load %arg27[%c0_86, %c0_87] : memref<1x32xf32, #tpu.memory_space<vmem>>, vector<1x32xf32>
    %184 = vector.broadcast %183 : vector<1x32xf32> to vector<8x32xf32>
    %185 = arith.mulf %182, %184 : vector<8x32xf32>
    %c0_88 = arith.constant 0 : index
    %c0_89 = arith.constant 0 : index
    %186 = vector.load %arg28[%c0_88, %c0_89] : memref<1x32xf32, #tpu.memory_space<vmem>>, vector<1x32xf32>
    %187 = vector.broadcast %186 : vector<1x32xf32> to vector<8x32xf32>
    %188 = arith.addf %185, %187 : vector<8x32xf32>
    %c0_90 = arith.constant 0 : index
    %c0_91 = arith.constant 0 : index
    %c0_92 = arith.constant 0 : index
    %189 = vector.load %arg29[%c0_90, %c0_91, %c0_92] : memref<1x8x32xf32, #tpu.memory_space<vmem>>, vector<1x8x32xf32>
    %190 = vector.shape_cast %189 : vector<1x8x32xf32> to vector<8x32xf32>
    %191 = vector.shape_cast %188 : vector<8x32xf32> to vector<1x8x32xf32>
    tpu.vector_store %arg29[%c0_90, %c0_91, %c0_92], %191 {strides = array<i32>} : memref<1x8x32xf32, #tpu.memory_space<vmem>>, vector<1x8x32xf32>,
    return
  }
  func.func @transform_0(%arg0: i32) -> (i32, i32, i32) {
    %c0_i32 = arith.constant 0 : i32
    %c0_i32_0 = arith.constant 0 : i32
    %c0_i32_1 = arith.constant 0 : i32
    return %arg0, %c0_i32, %c0_i32_0 : i32, i32, i32
  }
  func.func @transform_1(%arg0: i32) -> (i32, i32, i32) {
    %c0_i32 = arith.constant 0 : i32
    %c0_i32_0 = arith.constant 0 : i32
    %c0_i32_1 = arith.constant 0 : i32
    return %arg0, %c0_i32, %c0_i32_0 : i32, i32, i32
  }
  func.func @transform_2(%arg0: i32) -> (i32, i32) {
    %c0_i32 = arith.constant 0 : i32
    %c0_i32_0 = arith.constant 0 : i32
    %c0_i32_1 = arith.constant 0 : i32
    return %c0_i32, %c0_i32_0 : i32, i32
  }
  func.func @transform_3(%arg0: i32) -> (i32, i32) {
    %c0_i32 = arith.constant 0 : i32
    %c0_i32_0 = arith.constant 0 : i32
    %c0_i32_1 = arith.constant 0 : i32
    return %c0_i32, %c0_i32_0 : i32, i32
  }
  func.func @transform_4(%arg0: i32) -> (i32, i32) {
    %c0_i32 = arith.constant 0 : i32
    %c0_i32_0 = arith.constant 0 : i32
    %c0_i32_1 = arith.constant 0 : i32
    return %c0_i32, %c0_i32_0 : i32, i32
  }
  func.func @transform_5(%arg0: i32) -> (i32, i32) {
    %c0_i32 = arith.constant 0 : i32
    %c0_i32_0 = arith.constant 0 : i32
    %c0_i32_1 = arith.constant 0 : i32
    return %c0_i32, %c0_i32_0 : i32, i32
  }
  func.func @transform_6(%arg0: i32) -> (i32, i32) {
    %c0_i32 = arith.constant 0 : i32
    %c0_i32_0 = arith.constant 0 : i32
    %c0_i32_1 = arith.constant 0 : i32
    return %c0_i32, %c0_i32_0 : i32, i32
  }
  func.func @transform_7(%arg0: i32) -> (i32, i32) {
    %c0_i32 = arith.constant 0 : i32
    %c0_i32_0 = arith.constant 0 : i32
    %c0_i32_1 = arith.constant 0 : i32
    return %c0_i32, %c0_i32_0 : i32, i32
  }
  func.func @transform_8(%arg0: i32) -> (i32, i32) {
    %c0_i32 = arith.constant 0 : i32
    %c0_i32_0 = arith.constant 0 : i32
    %c0_i32_1 = arith.constant 0 : i32
    return %c0_i32, %c0_i32_0 : i32, i32
  }
  func.func @transform_9(%arg0: i32) -> (i32, i32) {
    %c0_i32 = arith.constant 0 : i32
    %c0_i32_0 = arith.constant 0 : i32
    %c0_i32_1 = arith.constant 0 : i32
    return %c0_i32, %c0_i32_0 : i32, i32
  }
  func.func @transform_10(%arg0: i32) -> (i32, i32) {
    %c0_i32 = arith.constant 0 : i32
    %c0_i32_0 = arith.constant 0 : i32
    %c0_i32_1 = arith.constant 0 : i32
    return %c0_i32, %c0_i32_0 : i32, i32
  }
  func.func @transform_11(%arg0: i32) -> (i32, i32) {
    %c0_i32 = arith.constant 0 : i32
    %c0_i32_0 = arith.constant 0 : i32
    %c0_i32_1 = arith.constant 0 : i32
    return %c0_i32, %c0_i32_0 : i32, i32
  }
  func.func @transform_12(%arg0: i32) -> (i32, i32) {
    %c0_i32 = arith.constant 0 : i32
    %c0_i32_0 = arith.constant 0 : i32
    %c0_i32_1 = arith.constant 0 : i32
    return %c0_i32, %c0_i32_0 : i32, i32
  }
  func.func @transform_13(%arg0: i32) -> (i32, i32) {
    %c0_i32 = arith.constant 0 : i32
    %c0_i32_0 = arith.constant 0 : i32
    %c0_i32_1 = arith.constant 0 : i32
    return %c0_i32, %c0_i32_0 : i32, i32
  }
  func.func @transform_14(%arg0: i32) -> (i32, i32) {
    %c0_i32 = arith.constant 0 : i32
    %c0_i32_0 = arith.constant 0 : i32
    %c0_i32_1 = arith.constant 0 : i32
    return %c0_i32, %c0_i32_0 : i32, i32
  }
  func.func @transform_15(%arg0: i32) -> (i32, i32) {
    %c0_i32 = arith.constant 0 : i32
    %c0_i32_0 = arith.constant 0 : i32
    %c0_i32_1 = arith.constant 0 : i32
    return %c0_i32, %c0_i32_0 : i32, i32
  }
  func.func @transform_16(%arg0: i32) -> (i32, i32) {
    %c0_i32 = arith.constant 0 : i32
    %c0_i32_0 = arith.constant 0 : i32
    %c0_i32_1 = arith.constant 0 : i32
    return %c0_i32, %c0_i32_0 : i32, i32
  }
  func.func @transform_17(%arg0: i32) -> (i32, i32) {
    %c0_i32 = arith.constant 0 : i32
    %c0_i32_0 = arith.constant 0 : i32
    %c0_i32_1 = arith.constant 0 : i32
    return %c0_i32, %c0_i32_0 : i32, i32
  }
  func.func @transform_18(%arg0: i32) -> (i32, i32) {
    %c0_i32 = arith.constant 0 : i32
    %c0_i32_0 = arith.constant 0 : i32
    %c0_i32_1 = arith.constant 0 : i32
    return %c0_i32, %c0_i32_0 : i32, i32
  }
  func.func @transform_19(%arg0: i32) -> (i32, i32) {
    %c0_i32 = arith.constant 0 : i32
    %c0_i32_0 = arith.constant 0 : i32
    %c0_i32_1 = arith.constant 0 : i32
    return %c0_i32, %c0_i32_0 : i32, i32
  }
  func.func @transform_20(%arg0: i32) -> (i32, i32) {
    %c0_i32 = arith.constant 0 : i32
    %c0_i32_0 = arith.constant 0 : i32
    %c0_i32_1 = arith.constant 0 : i32
    return %c0_i32, %c0_i32_0 : i32, i32
  }
  func.func @transform_21(%arg0: i32) -> (i32, i32) {
    %c0_i32 = arith.constant 0 : i32
    %c0_i32_0 = arith.constant 0 : i32
    %c0_i32_1 = arith.constant 0 : i32
    return %c0_i32, %c0_i32_0 : i32, i32
  }
  func.func @transform_22(%arg0: i32) -> (i32, i32) {
    %c0_i32 = arith.constant 0 : i32
    %c0_i32_0 = arith.constant 0 : i32
    %c0_i32_1 = arith.constant 0 : i32
    return %c0_i32, %c0_i32_0 : i32, i32
  }
  func.func @transform_23(%arg0: i32) -> (i32, i32) {
    %c0_i32 = arith.constant 0 : i32
    %c0_i32_0 = arith.constant 0 : i32
    %c0_i32_1 = arith.constant 0 : i32
    return %c0_i32, %c0_i32_0 : i32, i32
  }
  func.func @transform_24(%arg0: i32) -> (i32, i32) {
    %c0_i32 = arith.constant 0 : i32
    %c0_i32_0 = arith.constant 0 : i32
    %c0_i32_1 = arith.constant 0 : i32
    return %c0_i32, %c0_i32_0 : i32, i32
  }
  func.func @transform_25(%arg0: i32) -> (i32, i32) {
    %c0_i32 = arith.constant 0 : i32
    %c0_i32_0 = arith.constant 0 : i32
    %c0_i32_1 = arith.constant 0 : i32
    return %c0_i32, %c0_i32_0 : i32, i32
  }
  func.func @transform_26(%arg0: i32) -> (i32, i32) {
    %c0_i32 = arith.constant 0 : i32
    %c0_i32_0 = arith.constant 0 : i32
    %c0_i32_1 = arith.constant 0 : i32
    return %c0_i32, %c0_i32_0 : i32, i32
  }
  func.func @transform_27(%arg0: i32) -> (i32, i32) {
    %c0_i32 = arith.constant 0 : i32
    %c0_i32_0 = arith.constant 0 : i32
    %c0_i32_1 = arith.constant 0 : i32
    return %c0_i32, %c0_i32_0 : i32, i32
  }
  func.func @transform_28(%arg0: i32) -> (i32, i32, i32) {
    %c0_i32 = arith.constant 0 : i32
    %c0_i32_0 = arith.constant 0 : i32
    %c0_i32_1 = arith.constant 0 : i32
    return %arg0, %c0_i32, %c0_i32_0 : i32, i32, i32
  }
}

</mosaic_0001>

<bundles_post_ra>
// kernel: tpu_custom_call.1
= control target key start
LH: loop header
LB: loop body
LE: loop exit
PB: predicated region body
PF: predicated region fallthrough
CT: control target
= control target key end

     0   :  { %s6598_s0 = inlined_call_operand.vmem [shape: f32[2,8,32], index: 0, kind: input, shape index: {}]   ;;  %s6599_s1 = inlined_call_operand.vmem [shape: f32[2,16,32], index: 1, kind: input, shape index: {}]   ;;  %s6600_s2 = inlined_call_operand.hbm [shape: bf16[32,32], index: 2, kind: input, shape index: {}]   ;;  %s6601_s3 = inlined_call_operand.hbm [shape: f32[1,32], index: 3, kind: input, shape index: {}]   ;;  %s6602_s4 = inlined_call_operand.hbm [shape: bf16[32,32], index: 4, kind: input, shape index: {}]   ;;  %s6603_s5 = inlined_call_operand.hbm [shape: f32[1,32], index: 5, kind: input, shape index: {}]   ;;  %s6604_s6 = inlined_call_operand.hbm [shape: bf16[32,32], index: 6, kind: input, shape index: {}]   ;;  %s6605_s7 = inlined_call_operand.hbm [shape: f32[1,32], index: 7, kind: input, shape index: {}]   ;;  %s6606_s8 = inlined_call_operand.hbm [shape: bf16[32,32], index: 8, kind: input, shape index: {}]   ;;  %s6607_s9 = inlined_call_operand.hbm [shape: f32[1,32], index: 9, kind: input, shape index: {}]   ;;  %s6608_s10 = inlined_call_operand.vmem [shape: bf16[32,32], index: 10, kind: input, shape index: {}]   ;;  %s6609_s11 = inlined_call_operand.hbm [shape: f32[1,32], index: 11, kind: input, shape index: {}]   ;;  %s6610_s12 = inlined_call_operand.hbm [shape: bf16[32,32], index: 12, kind: input, shape index: {}]   ;;  %s6611_s13 = inlined_call_operand.hbm [shape: f32[1,32], index: 13, kind: input, shape index: {}]   ;;  %s6612_s14 = inlined_call_operand.vmem [shape: bf16[32,32], index: 14, kind: input, shape index: {}]   ;;  %s6613_s15 = inlined_call_operand.hbm [shape: f32[1,32], index: 15, kind: input, shape index: {}]   ;;  %s6614_s16 = inlined_call_operand.hbm [shape: bf16[32,32], index: 16, kind: input, shape index: {}]   ;;  %s6615_s17 = inlined_call_operand.hbm [shape: f32[1,32], index: 17, kind: input, shape index: {}]   ;;  %s6616_s18 = inlined_call_operand.vmem [shape: bf16[32,64], index: 18, kind: input, shape index: {}]   ;;  %s6617_s19 = inlined_call_operand.vmem [shape: f32[1,64], index: 19, kind: input, shape index: {}]   ;;  %s6618_s20 = inlined_call_operand.vmem [shape: bf16[64,32], index: 20, kind: input, shape index: {}]   ;;  %s6619_s21 = inlined_call_operand.vmem [shape: f32[1,32], index: 21, kind: input, shape index: {}]   ;;  %s6620_s22 = inlined_call_operand.vmem [shape: f32[1,32], index: 22, kind: input, shape index: {}]   ;;  %s6621_s23 = inlined_call_operand.vmem [shape: f32[1,32], index: 23, kind: input, shape index: {}]   ;;  %s6622_s24 = inlined_call_operand.vmem [shape: f32[1,32], index: 24, kind: input, shape index: {}]   ;;  %s6623_s25 = inlined_call_operand.vmem [shape: f32[1,32], index: 25, kind: input, shape index: {}]   ;;  %s6624_s26 = inlined_call_operand.vmem [shape: f32[1,32], index: 26, kind: input, shape index: {}]   ;;  %s6625_s27 = inlined_call_operand.vmem [shape: f32[1,32], index: 27, kind: input, shape index: {}]   ;;  %s6626_s28 = inlined_call_operand.hbm [shape: f32[2,8,32], index: 28, kind: output, shape index: {}]  }
   0x1   :  { %6662 = sst [smem:[#allocation43_spill]] %s6598_s0 }
   0x2   :  { %6663 = sst [smem:[#allocation44_spill]] %s6599_s1 }
   0x3   :  { %6664 = sst [smem:[#allocation45_spill]] %s6600_s2 }
   0x4   :  { %6665 = sst [smem:[#allocation46_spill]] %s6601_s3 }
   0x5   :  { %6666 = sst [smem:[#allocation47_spill]] %s6602_s4 }
   0x6   :  { %6667 = sst [smem:[#allocation48_spill]] %s6603_s5 }
   0x7   :  { %6668 = sst [smem:[#allocation49_spill]] %s6604_s6 }
   0x8   :  { %6669 = sst [smem:[#allocation50_spill]] %s6605_s7 }
   0x9   :  { %6670 = sst [smem:[#allocation51_spill]] %s6606_s8 }
   0xa   :  { %6671 = sst [smem:[#allocation52_spill]] %s6607_s9 }
   0xb   :  { %6672 = sst [smem:[#allocation53_spill]] %s6608_s10 }
   0xc   :  { %6673 = sst [smem:[#allocation54_spill]] %s6609_s11 }
   0xd   :  { %6674 = sst [smem:[#allocation55_spill]] %s6610_s12 }
   0xe   :  { %6675 = sst [smem:[#allocation56_spill]] %s6613_s15 }
   0xf   :  { %6676 = sst [smem:[#allocation57_spill]] %s6617_s19 }
  0x10   :  { %6677 = sst [smem:[#allocation58_spill]] %s6619_s21 }
  0x11   :  { %6678 = sst [smem:[#allocation59_spill]] %s6624_s26 }
  0x12   :  { %6679 = sst [smem:[#allocation60_spill]] %s6625_s27 }
  0x13   :  { %6680 = sst [smem:[#allocation61_spill]] %s6626_s28 }
  0x14   :  { %33 = vsyncpa [#allocation3], 0 }
  0x15   :  { %34 = vsyncpa [#allocation6], 0 }
  0x16   :  { %35 = vsyncpa [#allocation9], 0 }
  0x17   :  { %36 = vsyncpa [#allocation12], 0 }
  0x18   :  { %37 = vsyncpa [#allocation15], 0 }
  0x19   :  { %38 = vsyncpa [#allocation18], 0 }
  0x1a   :  { %39 = vsyncpa [#allocation21], 0 }
  0x1b   :  { %40 = vsyncpa [#allocation24], 0 }
  0x1c   :  { %41 = vsyncpa [#allocation4], 0 }
  0x1d   :  { %43 = vsyncpa [#allocation4 + $0x1], 0  ;;  %s5644_s8 = smov 0   ;;  %s5646_s5 = smov 0  }
  0x1e   :  { %s5648_s9 = smov 0   ;;  %s5650_s30 = smov 0  }
  0x1f LB: > { %6681 = sst [smem:[#allocation35_spill]] %s5458_s8  ;;  %s5665_s3 = sadd.s32 4294967295, %s5470_s30   ;;  %s5470_s30 = sphi %s5650_s30, %s6739_s30   ;;  %s5466_s9 = sphi %s5648_s9, %s6742_s9   ;;  %s5462_s5 = sphi %s5646_s5, %s6741_s5   ;;  %s5458_s8 = sphi %s5644_s8, %s6740_s8  }
  0x20   : > { %6682 = sst [smem:[#allocation36_spill]] %s5462_s5  ;;  %s4363_s6 = sadd.s32 4294967294, %s5470_s30  }
  0x21   : > { %6683 = sst [smem:[#allocation37_spill]] %s5466_s9  ;;  %s5669_s10 = sadd.s32 1, %s5470_s30  }
  0x22   : > { %6684 = sst [smem:[#allocation38_spill]] %s5470_s30  ;;  %s654_s0 = sadd.s32 1, %s5466_s9 }
  0x23   : > { %6685 = sst [smem:[#allocation39_spill]] %s5669_s10  ;;  %s651_s11 = ssub.s32 %s5470_s30, %s5669_s10 }
  0x24   : > { %p664_p0 = scmp.ne.s32.totalorder %s5466_s9, %s5462_s5  ;;  %p652_p1 = scmp.eq.s32.totalorder %s651_s11, 0 }
  0x25   : > { %p665_p2 = scmp.eq.s32.totalorder %s5665_s3, 1  ;;  %p670_p3 = scmp.ne.s32.totalorder %s5462_s5, %s5458_s8 }
  0x26   : > { %p671_p4 = scmp.eq.s32.totalorder %s4363_s6, 1  ;;  %p4364_p7 = scmp.ge.s32.totalorder %s5470_s30, 1 }
  0x27   : > { %s5680_s29 = scalar_select %p652_p1, %s5466_s9, %s654_s0  }
  0x28   : > { %p5682_p5 = por %p665_p2, %p664_p0  ;;  %p5686_p6 = por %p671_p4, %p670_p3 }
  0x29   : > { %6686 = sst [smem:[#allocation40_spill]] %s5680_s29  ;;  %p678_p8 = scmp.lt.s32.totalorder %s5470_s30, 3 }
  0x2a   : > { %s6687_s2 = scalar_select %p5682_p5, 1, 0 }
  0x2b   : > { %s6689_s7 = scalar_select %p5686_p6, 1, 0 }
  0x2c   : > { %6688 = sst [smem:[#allocation41_spill]] %s6687_s2  ;;  %p6645_p9 = scmp.eq.s32.totalorder %s5665_s3, 0 }
  0x2d   : > { %6690 = sst [smem:[#allocation42_spill]] %s6689_s7  ;;  %p5693_p10 = pnand %p4364_p7, %p678_p8 }
  0x2e   : > { %s5472_s1 = smov [#allocation5]   ;;  %s5473_s6 = smov [#allocation8]  }
  0x2f   : > { %s6691_s12 = scalar_select %p5693_p10, 1, 0 }
  0x30   : > { %s704_s4 = sshll.u32 %s5472_s1, 4  ;;  %p4790_p11 = pneg %p5693_p10  ;;  %s705_s4 = int_to_ptr.vmem [resolvable:$true] %s704_s4 }
  0x31   : > { %s728_s0 = sshll.u32 %s5473_s6, 4  ;;  %s5474_s29 = smov [#allocation11]   ;;  %s5705_s0 = int_to_ptr.vmem [resolvable:$true] %s728_s0 }
  0x32   : > { %p5701_p12 = pnand %p6645_p9, %p4790_p11  ;;  %s752_s9 = sshll.u32 %s5474_s29, 4  ;;  %s5707_s9 = int_to_ptr.vmem [resolvable:$true] %s752_s9 }
  0x33   : > { %s6693_s1 = sld [smem:[#allocation46_spill]] }
  0x34   : > { %p5717_p0 = pneg %p5701_p12 }
  0x39   : > { %s4984_s8 = scalar_lea.hbm %s6693_s1, 16 }
  0x3a   : > { %p4985_p13 = scmp.ne.s32.totalorder %s6693_s1, %s4984_s8  ;;  %p4991_p3 = scmp.lt.u32.totalorder %s4984_s8, %s6693_s1 }
  0x3c   : > { %p4987_p1 = pnand %p5717_p0, %p4985_p13 }
  0x3e   : > { %p4988_p2 = pneg %p4987_p1 }
  0x40   : > { %p4993_p4 = pnand %p4991_p3, %p4988_p2 }
  0x42   : > { %4996 = shalt.err (!%p4993_p4)
}
  0x43   : > { %s4997_s10 = scalar_lea.vmem %s705_s4, 16  ;;  %s5004_s28 = scalar_lea.vmem %s705_s4, 32 }
  0x44   : > { %p4998_p7 = scmp.ne.s32.totalorder %s705_s4, %s4997_s10  ;;  %p5005_p9 = scmp.lt.s32.totalorder %s705_s4, %s705_s4 }
  0x45   : > { %p5006_p6 = scmp.lt.s32.totalorder %s5004_s28, %s4997_s10 }
  0x46   : > { %p5000_p8 = pnand %p4998_p7, %p5717_p0 }
  0x47   : > { %p5007_p5 = por %p5006_p6, %p5005_p9 }
  0x48   : > { %p5001_p11 = pneg %p5000_p8 }
  0x4a   : > { %p5008_p10 = pnand %p5007_p5, %p5001_p11 }
  0x4c   : > { %5011 = shalt.err (!%p5008_p10)
}
  0x4d   : > { %4796 = dma.hbm_to_vmem [thread:$0]  (!%p5701_p12), %s6693_s1, 16, %s705_s4, [#allocation6]  }
  0x4e   : > { %s6695_s29 = sld [smem:[#allocation48_spill]] }
  0x54   : > { %s5012_s26 = scalar_lea.hbm %s6695_s29, 16 }
  0x55   : > { %p5013_p13 = scmp.ne.s32.totalorder %s6695_s29, %s5012_s26  ;;  %p5019_p5 = scmp.lt.u32.totalorder %s5012_s26, %s6695_s29 }
  0x57   : > { %p5015_p1 = pnand %p5013_p13, %p5717_p0 }
  0x59   : > { %p5016_p6 = pneg %p5015_p1 }
  0x5b   : > { %p5021_p9 = pnand %p5019_p5, %p5016_p6 }
  0x5d   : > { %5024 = shalt.err (!%p5021_p9)
}
  0x5e   : > { %s5025_s4 = scalar_lea.vmem %s5705_s0, 16  ;;  %s5032_s5 = scalar_lea.vmem %s5705_s0, 32 }
  0x5f   : > { %p5026_p10 = scmp.ne.s32.totalorder %s5705_s0, %s5025_s4  ;;  %p5033_p4 = scmp.lt.s32.totalorder %s5705_s0, %s5705_s0 }
  0x60   : > { %p5034_p7 = scmp.lt.s32.totalorder %s5032_s5, %s5025_s4 }
  0x61   : > { %p5028_p2 = pnand %p5026_p10, %p5717_p0 }
  0x62   : > { %p5035_p8 = por %p5034_p7, %p5033_p4 }
  0x63   : > { %p5029_p3 = pneg %p5028_p2 }
  0x65   : > { %p5036_p11 = pnand %p5035_p8, %p5029_p3 }
  0x67   : > { %5039 = shalt.err (!%p5036_p11)
}
  0x68   : > { %4802 = dma.hbm_to_vmem [thread:$0]  (!%p5701_p12), %s6695_s29, 16, %s5705_s0, [#allocation9]  }
  0x69   : > { %s6696_s27 = sld [smem:[#allocation50_spill]] }
  0x6f   : > { %s5040_s8 = scalar_lea.hbm %s6696_s27, 16 }
  0x70   : > { %p5041_p13 = scmp.ne.s32.totalorder %s6696_s27, %s5040_s8  ;;  %p5047_p5 = scmp.lt.u32.totalorder %s5040_s8, %s6696_s27 }
  0x72   : > { %p5043_p1 = pnand %p5041_p13, %p5717_p0 }
  0x74   : > { %p5044_p6 = pneg %p5043_p1 }
  0x76   : > { %p5049_p9 = pnand %p5047_p5, %p5044_p6 }
  0x78   : > { %5052 = shalt.err (!%p5049_p9)
}
  0x79   : > { %s5053_s0 = scalar_lea.vmem %s5707_s9, 16  ;;  %s5060_s26 = scalar_lea.vmem %s5707_s9, 32 }
  0x7a   : > { %p5054_p10 = scmp.ne.s32.totalorder %s5707_s9, %s5053_s0  ;;  %p5061_p4 = scmp.lt.s32.totalorder %s5707_s9, %s5707_s9 }
  0x7b   : > { %p5062_p7 = scmp.lt.s32.totalorder %s5060_s26, %s5053_s0 }
  0x7c   : > { %p5056_p2 = pnand %p5054_p10, %p5717_p0 }
  0x7d   : > { %p5063_p8 = por %p5062_p7, %p5061_p4 }
  0x7e   : > { %p5057_p3 = pneg %p5056_p2 }
  0x80   : > { %p5064_p11 = pnand %p5063_p8, %p5057_p3 }
  0x82   : > { %5067 = shalt.err (!%p5064_p11)
}
  0x83   : > { %4808 = dma.hbm_to_vmem [thread:$0]  (!%p5701_p12), %s6696_s27, 16, %s5707_s9, [#allocation12]  }
  0x84   : > { %s5475_s7 = smov [#allocation14]   ;;  %s6697_s4 = sld [smem:[#allocation52_spill]] }
  0x85   : > { %s776_s8 = sshll.u32 %s5475_s7, 4  ;;  %s777_s8 = int_to_ptr.vmem [resolvable:$true] %s776_s8 }
  0x8a   : > { %s5068_s5 = scalar_lea.hbm %s6697_s4, 16 }
  0x8b   : > { %p5069_p13 = scmp.ne.s32.totalorder %s6697_s4, %s5068_s5  ;;  %p5075_p5 = scmp.lt.u32.totalorder %s5068_s5, %s6697_s4 }
  0x8d   : > { %p5071_p1 = pnand %p5069_p13, %p5717_p0 }
  0x8f   : > { %p5072_p6 = pneg %p5071_p1 }
  0x91   : > { %p5077_p9 = pnand %p5075_p5, %p5072_p6 }
  0x93   : > { %5080 = shalt.err (!%p5077_p9)
}
  0x94   : > { %s5081_s9 = scalar_lea.vmem %s777_s8, 16  ;;  %s5088_s2 = scalar_lea.vmem %s777_s8, 32 }
  0x95   : > { %p5082_p10 = scmp.ne.s32.totalorder %s777_s8, %s5081_s9  ;;  %p5089_p4 = scmp.lt.s32.totalorder %s777_s8, %s777_s8 }
  0x96   : > { %p5090_p7 = scmp.lt.s32.totalorder %s5088_s2, %s5081_s9 }
  0x97   : > { %p5084_p2 = pnand %p5082_p10, %p5717_p0 }
  0x98   : > { %p5091_p8 = por %p5090_p7, %p5089_p4 }
  0x99   : > { %p5085_p3 = pneg %p5084_p2 }
  0x9b   : > { %p5092_p11 = pnand %p5091_p8, %p5085_p3 }
  0x9d   : > { %5095 = shalt.err (!%p5092_p11)
}
  0x9e   : > { %4814 = dma.hbm_to_vmem [thread:$0]  (!%p5701_p12), %s6697_s4, 16, %s777_s8, [#allocation15]  }
  0x9f   : > { %s5476_s29 = smov [#allocation17]   ;;  %s5477_s10 = smov [#allocation20]  }
  0xa0   : > { %s800_s7 = sshll.u32 %s5476_s29, 4  ;;  %s828_s28 = sshll.u32 %s5477_s10, 4  ;;  %s801_s7 = int_to_ptr.vmem [resolvable:$true] %s800_s7  ;;  %s5799_s28 = int_to_ptr.vmem [resolvable:$true] %s828_s28 }
  0xa1   : > { %s6698_s26 = sld [smem:[#allocation55_spill]] }
  0xa7   : > { %s5096_s9 = scalar_lea.hbm %s6698_s26, 256 }
  0xa8   : > { %p5097_p13 = scmp.ne.s32.totalorder %s6698_s26, %s5096_s9  ;;  %p5103_p5 = scmp.lt.u32.totalorder %s5096_s9, %s6698_s26 }
  0xaa   : > { %p5099_p1 = pnand %p5097_p13, %p5717_p0 }
  0xac   : > { %p5100_p6 = pneg %p5099_p1 }
  0xae   : > { %p5105_p9 = pnand %p5103_p5, %p5100_p6 }
  0xb0   : > { %5108 = shalt.err (!%p5105_p9)
}
  0xb1   : > { %s5109_s30 = scalar_lea.vmem %s801_s7, 256  ;;  %p5117_p4 = scmp.lt.s32.totalorder %s801_s7, %s801_s7 }
  0xb2   : > { %p5110_p10 = scmp.ne.s32.totalorder %s801_s7, %s5109_s30  ;;  %p5118_p7 = scmp.lt.s32.totalorder %s5109_s30, %s5109_s30 }
  0xb4   : > { %p5112_p2 = pnand %p5110_p10, %p5717_p0  ;;  %p5119_p8 = por %p5118_p7, %p5117_p4 }
  0xb6   : > { %p5113_p3 = pneg %p5112_p2 }
  0xb8   : > { %p5120_p11 = pnand %p5119_p8, %p5113_p3 }
  0xba   : > { %5123 = shalt.err (!%p5120_p11)
}
  0xbb   : > { %s6655_s27 = smov 64   ;;  %s6657_s29 = smov 4  }
  0xbc   : > { %4820 = dma.hbm_to_vmem [thread:$0]  (!%p5701_p12), %s6698_s26, 256, %s801_s7, [#allocation18], %s6655_s27, %s6655_s27, %s6657_s29  }
  0xbd   : > { %s6699_s15 = sld [smem:[#allocation56_spill]] }
  0xc3   : > { %s5124_s2 = scalar_lea.hbm %s6699_s15, 16 }
  0xc4   : > { %p5125_p13 = scmp.ne.s32.totalorder %s6699_s15, %s5124_s2  ;;  %p5131_p5 = scmp.lt.u32.totalorder %s5124_s2, %s6699_s15 }
  0xc6   : > { %p5127_p1 = pnand %p5125_p13, %p5717_p0 }
  0xc8   : > { %p5128_p6 = pneg %p5127_p1 }
  0xca   : > { %p5133_p9 = pnand %p5131_p5, %p5128_p6 }
  0xcc   : > { %5136 = shalt.err (!%p5133_p9)
}
  0xcd   : > { %s5137_s7 = scalar_lea.vmem %s5799_s28, 16  ;;  %s5144_s10 = scalar_lea.vmem %s5799_s28, 32 }
  0xce   : > { %p5138_p10 = scmp.ne.s32.totalorder %s5799_s28, %s5137_s7  ;;  %p5145_p4 = scmp.lt.s32.totalorder %s5799_s28, %s5799_s28 }
  0xcf   : > { %p5146_p7 = scmp.lt.s32.totalorder %s5144_s10, %s5137_s7 }
  0xd0   : > { %p5140_p2 = pnand %p5138_p10, %p5717_p0 }
  0xd1   : > { %p5147_p8 = por %p5146_p7, %p5145_p4 }
  0xd2   : > { %p5141_p3 = pneg %p5140_p2 }
  0xd4   : > { %p5148_p11 = pnand %p5147_p8, %p5141_p3 }
  0xd6   : > { %5151 = shalt.err (!%p5148_p11)
}
  0xd7   : > { %4826 = dma.hbm_to_vmem [thread:$0]  (!%p5701_p12), %s6699_s15, 16, %s5799_s28, [#allocation21]  }
  0xd8   : > { %s5480_s0 = smov [#allocation2]   ;;  %s5481_s2 = smov [#allocation7]  }
  0xd9   : > { %s690_s9 = sshll.u32 %s5480_s0, 4  ;;  %s714_s1 = sshll.u32 %s5481_s2, 4  ;;  %s691_s9 = int_to_ptr.vmem [resolvable:$true] %s690_s9  ;;  %s5846_s1 = int_to_ptr.vmem [resolvable:$true] %s714_s1 }
  0xda   : > { %s6700_s7 = sld [smem:[#allocation45_spill]] }
  0xe0   : > { %s5152_s10 = scalar_lea.hbm %s6700_s7, 256 }
  0xe1   : > { %p5153_p13 = scmp.ne.s32.totalorder %s6700_s7, %s5152_s10  ;;  %p5159_p5 = scmp.lt.u32.totalorder %s5152_s10, %s6700_s7 }
  0xe3   : > { %p5155_p1 = pnand %p5153_p13, %p5717_p0 }
  0xe5   : > { %p5156_p6 = pneg %p5155_p1 }
  0xe7   : > { %p5161_p9 = pnand %p5159_p5, %p5156_p6 }
  0xe9   : > { %5164 = shalt.err (!%p5161_p9)
}
  0xea   : > { %s5165_s5 = scalar_lea.vmem %s691_s9, 256  ;;  %p5173_p4 = scmp.lt.s32.totalorder %s691_s9, %s691_s9 }
  0xeb   : > { %p5166_p10 = scmp.ne.s32.totalorder %s691_s9, %s5165_s5  ;;  %p5174_p7 = scmp.lt.s32.totalorder %s5165_s5, %s5165_s5 }
  0xed   : > { %p5168_p2 = pnand %p5166_p10, %p5717_p0  ;;  %p5175_p8 = por %p5174_p7, %p5173_p4 }
  0xef   : > { %p5169_p3 = pneg %p5168_p2 }
  0xf1   : > { %p5176_p11 = pnand %p5175_p8, %p5169_p3 }
  0xf3   : > { %5179 = shalt.err (!%p5176_p11)
}
  0xf4   : > { %s6701_s27 = smov 4   ;;  %s6702_s29 = smov 64  }
  0xf5   : > { %4793 = dma.hbm_to_vmem [thread:$0]  (!%p5701_p12), %s6700_s7, 256, %s691_s9, [#allocation3], %s6702_s29, %s6702_s29, %s6701_s27  }
  0xf6   : > { %s6703_s10 = sld [smem:[#allocation47_spill]] }
  0xfc   : > { %s5180_s4 = scalar_lea.hbm %s6703_s10, 256 }
  0xfd   : > { %p5181_p13 = scmp.ne.s32.totalorder %s6703_s10, %s5180_s4  ;;  %p5187_p5 = scmp.lt.u32.totalorder %s5180_s4, %s6703_s10 }
  0xff   : > { %p5183_p1 = pnand %p5181_p13, %p5717_p0 }
 0x101   : > { %p5184_p6 = pneg %p5183_p1 }
 0x103   : > { %p5189_p9 = pnand %p5187_p5, %p5184_p6 }
 0x105   : > { %5192 = shalt.err (!%p5189_p9)
}
 0x106   : > { %s5193_s9 = scalar_lea.vmem %s5846_s1, 256  ;;  %p5201_p4 = scmp.lt.s32.totalorder %s5846_s1, %s5846_s1 }
 0x107   : > { %p5194_p10 = scmp.ne.s32.totalorder %s5846_s1, %s5193_s9  ;;  %p5202_p7 = scmp.lt.s32.totalorder %s5193_s9, %s5193_s9 }
 0x109   : > { %p5196_p2 = pnand %p5194_p10, %p5717_p0  ;;  %p5203_p8 = por %p5202_p7, %p5201_p4 }
 0x10b   : > { %p5197_p3 = pneg %p5196_p2 }
 0x10d   : > { %p5204_p11 = pnand %p5203_p8, %p5197_p3 }
 0x10f   : > { %5207 = shalt.err (!%p5204_p11)
}
 0x110   : > { %4799 = dma.hbm_to_vmem [thread:$0]  (!%p5701_p12), %s6703_s10, 256, %s5846_s1, [#allocation6], %s6702_s29, %s6702_s29, %s6701_s27  }
 0x111   : > { %s5482_s0 = smov [#allocation10]   ;;  %s5483_s8 = smov [#allocation13]  }
 0x112   : > { %s738_s2 = sshll.u32 %s5482_s0, 4  ;;  %s762_s30 = sshll.u32 %s5483_s8, 4  ;;  %s739_s2 = int_to_ptr.vmem [resolvable:$true] %s738_s2  ;;  %s5895_s30 = int_to_ptr.vmem [resolvable:$true] %s762_s30 }
 0x113   : > { %s6704_s5 = sld [smem:[#allocation49_spill]] }
 0x119   : > { %s6705_s7 = smov %s6704_s5  ;;  %s5208_s9 = scalar_lea.hbm %s6704_s5, 256 }
 0x11a   : > { %p5209_p13 = scmp.ne.s32.totalorder %s6705_s7, %s5208_s9  ;;  %p5215_p5 = scmp.lt.u32.totalorder %s5208_s9, %s6705_s7 }
 0x11c   : > { %p5211_p1 = pnand %p5209_p13, %p5717_p0 }
 0x11e   : > { %p5212_p6 = pneg %p5211_p1 }
 0x120   : > { %p5217_p9 = pnand %p5215_p5, %p5212_p6 }
 0x122   : > { %5220 = shalt.err (!%p5217_p9)
}
 0x123   : > { %s5221_s26 = scalar_lea.vmem %s739_s2, 256  ;;  %p5229_p4 = scmp.lt.s32.totalorder %s739_s2, %s739_s2 }
 0x124   : > { %p5222_p10 = scmp.ne.s32.totalorder %s739_s2, %s5221_s26  ;;  %p5230_p7 = scmp.lt.s32.totalorder %s5221_s26, %s5221_s26 }
 0x126   : > { %p5224_p2 = pnand %p5222_p10, %p5717_p0  ;;  %p5231_p8 = por %p5230_p7, %p5229_p4 }
 0x128   : > { %p5225_p3 = pneg %p5224_p2 }
 0x12a   : > { %p5232_p11 = pnand %p5231_p8, %p5225_p3 }
 0x12c   : > { %5235 = shalt.err (!%p5232_p11)
}
 0x12d   : > { %4805 = dma.hbm_to_vmem [thread:$0]  (!%p5701_p12), %s6705_s7, 256, %s739_s2, [#allocation9], %s6702_s29, %s6702_s29, %s6701_s27  }
 0x12e   : > { %s6706_s4 = sld [smem:[#allocation51_spill]] }
 0x134   : > { %s5236_s28 = scalar_lea.hbm %s6706_s4, 256 }
 0x135   : > { %p5237_p13 = scmp.ne.s32.totalorder %s6706_s4, %s5236_s28  ;;  %p5243_p5 = scmp.lt.u32.totalorder %s5236_s28, %s6706_s4 }
 0x137   : > { %p5239_p1 = pnand %p5237_p13, %p5717_p0 }
 0x139   : > { %p5240_p6 = pneg %p5239_p1 }
 0x13b   : > { %p5245_p9 = pnand %p5243_p5, %p5240_p6 }
 0x13d   : > { %5248 = shalt.err (!%p5245_p9)
}
 0x13e   : > { %s5249_s2 = scalar_lea.vmem %s5895_s30, 256  ;;  %p5257_p4 = scmp.lt.s32.totalorder %s5895_s30, %s5895_s30 }
 0x13f   : > { %p5250_p10 = scmp.ne.s32.totalorder %s5895_s30, %s5249_s2  ;;  %p5258_p7 = scmp.lt.s32.totalorder %s5249_s2, %s5249_s2 }
 0x141   : > { %p5252_p2 = pnand %p5250_p10, %p5717_p0  ;;  %p5259_p8 = por %p5258_p7, %p5257_p4 }
 0x143   : > { %p5253_p3 = pneg %p5252_p2 }
 0x145   : > { %p5260_p11 = pnand %p5259_p8, %p5253_p3 }
 0x147   : > { %5263 = shalt.err (!%p5260_p11)
}
 0x148   : > { %4811 = dma.hbm_to_vmem [thread:$0]  (!%p5701_p12), %s6706_s4, 256, %s5895_s30, [#allocation12], %s6702_s29, %s6702_s29, %s6701_s27  }
 0x149   : > { %s5484_s21 = smov [#allocation16]   ;;  %s5485_s8 = smov [#allocation19]  }
 0x14a   : > { %s790_s0 = sshll.u32 %s5484_s21, 4  ;;  %s814_s28 = sshll.u32 %s5485_s8, 4  ;;  %s791_s0 = int_to_ptr.vmem [resolvable:$true] %s790_s0  ;;  %s5944_s28 = int_to_ptr.vmem [resolvable:$true] %s814_s28 }
 0x14b   : > { %s6707_s15 = sld [smem:[#allocation54_spill]] }
 0x151   : > { %s5264_s1 = scalar_lea.hbm %s6707_s15, 16 }
 0x152   : > { %p5265_p13 = scmp.ne.s32.totalorder %s6707_s15, %s5264_s1  ;;  %p5271_p5 = scmp.lt.u32.totalorder %s5264_s1, %s6707_s15 }
 0x154   : > { %p5267_p1 = pnand %p5265_p13, %p5717_p0 }
 0x156   : > { %p5268_p6 = pneg %p5267_p1 }
 0x158   : > { %p5273_p9 = pnand %p5271_p5, %p5268_p6 }
 0x15a   : > { %5276 = shalt.err (!%p5273_p9)
}
 0x15b   : > { %s5277_s19 = scalar_lea.vmem %s791_s0, 16  ;;  %s5284_s21 = scalar_lea.vmem %s791_s0, 32 }
 0x15c   : > { %p5278_p10 = scmp.ne.s32.totalorder %s791_s0, %s5277_s19  ;;  %p5285_p4 = scmp.lt.s32.totalorder %s791_s0, %s791_s0 }
 0x15d   : > { %p5286_p7 = scmp.lt.s32.totalorder %s5284_s21, %s5277_s19 }
 0x15e   : > { %p5280_p2 = pnand %p5278_p10, %p5717_p0 }
 0x15f   : > { %p5287_p8 = por %p5286_p7, %p5285_p4 }
 0x160   : > { %p5281_p3 = pneg %p5280_p2 }
 0x162   : > { %p5288_p11 = pnand %p5287_p8, %p5281_p3 }
 0x164   : > { %5291 = shalt.err (!%p5288_p11)
}
 0x165   : > { %4817 = dma.hbm_to_vmem [thread:$0]  (!%p5701_p12), %s6707_s15, 16, %s791_s0, [#allocation15]  }
 0x166   : > { %s5292_s1 = scalar_lea.hbm %s6611_s13, 16 }
 0x167   : > { %p5293_p13 = scmp.ne.s32.totalorder %s6611_s13, %s5292_s1  ;;  %p5299_p5 = scmp.lt.u32.totalorder %s5292_s1, %s6611_s13 }
 0x169   : > { %p5295_p1 = pnand %p5293_p13, %p5717_p0 }
 0x16b   : > { %p5296_p6 = pneg %p5295_p1 }
 0x16d   : > { %p5301_p9 = pnand %p5299_p5, %p5296_p6 }
 0x16f   : > { %5304 = shalt.err (!%p5301_p9)
}
 0x170   : > { %s5305_s0 = scalar_lea.vmem %s5944_s28, 16  ;;  %s5312_s21 = scalar_lea.vmem %s5944_s28, 32 }
 0x171   : > { %p5306_p10 = scmp.ne.s32.totalorder %s5944_s28, %s5305_s0  ;;  %p5313_p4 = scmp.lt.s32.totalorder %s5944_s28, %s5944_s28 }
 0x172   : > { %p5314_p7 = scmp.lt.s32.totalorder %s5312_s21, %s5305_s0 }
 0x173   : > { %p5308_p2 = pnand %p5306_p10, %p5717_p0 }
 0x174   : > { %p5315_p8 = por %p5314_p7, %p5313_p4 }
 0x175   : > { %p5309_p3 = pneg %p5308_p2 }
 0x177   : > { %p5316_p11 = pnand %p5315_p8, %p5309_p3 }
 0x179   : > { %5319 = shalt.err (!%p5316_p11)
}
 0x17a   : > { %4823 = dma.hbm_to_vmem [thread:$0]  (!%p5701_p12), %s6611_s13, 16, %s5944_s28, [#allocation18]  }
 0x17b   : > { %s5486_s5 = smov [#allocation22]   ;;  %s5487_s1 = smov [#allocation23]  }
 0x17c   : > { %s838_s9 = sshll.u32 %s5486_s5, 4  ;;  %s852_s2 = sshll.u32 %s5487_s1, 4  ;;  %s839_s9 = int_to_ptr.vmem [resolvable:$true] %s838_s9  ;;  %s5988_s2 = int_to_ptr.vmem [resolvable:$true] %s852_s2 }
 0x17d   : > { %s5320_s19 = scalar_lea.hbm %s6614_s16, 256 }
 0x17e   : > { %p5321_p13 = scmp.ne.s32.totalorder %s6614_s16, %s5320_s19  ;;  %p5327_p5 = scmp.lt.u32.totalorder %s5320_s19, %s6614_s16 }
 0x180   : > { %p5323_p1 = pnand %p5321_p13, %p5717_p0 }
 0x182   : > { %p5324_p6 = pneg %p5323_p1 }
 0x184   : > { %p5329_p9 = pnand %p5327_p5, %p5324_p6 }
 0x186   : > { %5332 = shalt.err (!%p5329_p9)
}
 0x187   : > { %s5333_s8 = scalar_lea.vmem %s839_s9, 256  ;;  %p5341_p4 = scmp.lt.s32.totalorder %s839_s9, %s839_s9 }
 0x188   : > { %p5334_p10 = scmp.ne.s32.totalorder %s839_s9, %s5333_s8  ;;  %p5342_p7 = scmp.lt.s32.totalorder %s5333_s8, %s5333_s8 }
 0x18a   : > { %p5336_p2 = pnand %p5334_p10, %p5717_p0  ;;  %p5343_p8 = por %p5342_p7, %p5341_p4 }
 0x18c   : > { %p5337_p3 = pneg %p5336_p2 }
 0x18e   : > { %p5344_p11 = pnand %p5343_p8, %p5337_p3 }
 0x190   : > { %5347 = shalt.err (!%p5344_p11)
}
 0x191   : > { %4829 = dma.hbm_to_vmem [thread:$0]  (!%p5701_p12), %s6614_s16, 256, %s839_s9, [#allocation21], %s6702_s29, %s6702_s29, %s6701_s27  }
 0x192   : > { %s5348_s19 = scalar_lea.hbm %s6615_s17, 16 }
 0x193   : > { %p5349_p13 = scmp.ne.s32.totalorder %s6615_s17, %s5348_s19  ;;  %p5355_p5 = scmp.lt.u32.totalorder %s5348_s19, %s6615_s17 }
 0x195   : > { %p5351_p1 = pnand %p5349_p13, %p5717_p0 }
 0x197   : > { %p5352_p6 = pneg %p5351_p1 }
 0x199   : > { %p5357_p9 = pnand %p5355_p5, %p5352_p6 }
 0x19b   : > { %5360 = shalt.err (!%p5357_p9)
}
 0x19c   : > { %s5361_s27 = scalar_lea.vmem %s5988_s2, 16  ;;  %s5368_s29 = scalar_lea.vmem %s5988_s2, 32 }
 0x19d   : > { %p5362_p10 = scmp.ne.s32.totalorder %s5988_s2, %s5361_s27  ;;  %p5369_p4 = scmp.lt.s32.totalorder %s5988_s2, %s5988_s2 }
 0x19e   : > { %p5370_p7 = scmp.lt.s32.totalorder %s5368_s29, %s5361_s27 }
 0x19f   : > { %p5364_p2 = pnand %p5362_p10, %p5717_p0 }
 0x1a0   : > { %p5371_p8 = por %p5370_p7, %p5369_p4 }
 0x1a1   : > { %p5365_p3 = pneg %p5364_p2 }
 0x1a3   : > { %p5372_p11 = pnand %p5371_p8, %p5365_p3 }
 0x1a5   : > { %5375 = shalt.err (!%p5372_p11)
}
 0x1a6   : > { %4832 = dma.hbm_to_vmem [thread:$0]  (!%p5701_p12), %s6615_s17, 16, %s5988_s2, [#allocation24]  }
 0x1a7   : > { %p6708_p13 = scmp.ne.s32.totalorder %s6691_s12, 0 }
 0x1a8   : > { %p6709_p0 = scmp.eq.s32.totalorder (!%p6708_p13), %s5665_s3, 0 }
 0x1a9   : > { %910 = sbr.rel (%p6708_p13) target bundleno = 4869 (0x1305), region = 132 }
 0x1b0   : > { %5421 = dma.done.wait (%p6709_p0), [#allocation3], 256   ;;  %p6710_p1 = pmov %p6709_p0 }
 0x1b1   : > { %p6711_p6 = pmov %p6709_p0 }
 0x1b2   : > { %5423 = vsyncadd (%p6710_p1), [#allocation3], 4294967040 }
 0x1b3   : > { %5425 = dma.done.wait (%p6711_p6), [#allocation6], 272   ;;  %p6712_p5 = pmov %p6709_p0 }
 0x1b4   : > { %p6713_p9 = pmov %p6709_p0 }
 0x1b5   : > { %5427 = vsyncadd (%p6712_p5), [#allocation6], 4294967024 }
 0x1b6   : > { %5429 = dma.done.wait (%p6713_p9), [#allocation9], 272   ;;  %p6714_p12 = pmov %p6709_p0 }
 0x1b7   : > { %p6715_p10 = pmov %p6709_p0 }
 0x1b8   : > { %5431 = vsyncadd (%p6714_p12), [#allocation9], 4294967024 }
 0x1b9   : > { %5433 = dma.done.wait (%p6715_p10), [#allocation12], 272   ;;  %p6716_p2 = pmov %p6709_p0 }
 0x1ba   : > { %p6717_p3 = pmov %p6709_p0 }
 0x1bb   : > { %5435 = vsyncadd (%p6716_p2), [#allocation12], 4294967024 }
 0x1bc   : > { %5437 = dma.done.wait (%p6717_p3), [#allocation15], 32   ;;  %p6718_p4 = pmov %p6709_p0 }
 0x1bd   : > { %p6719_p7 = pmov %p6709_p0 }
 0x1be   : > { %5439 = vsyncadd (%p6718_p4), [#allocation15], 4294967264 }
 0x1bf   : > { %5441 = dma.done.wait (%p6719_p7), [#allocation18], 272   ;;  %p6720_p8 = pmov %p6709_p0 }
 0x1c0   : > { %p6721_p11 = pmov %p6709_p0 }
 0x1c1   : > { %5443 = vsyncadd (%p6720_p8), [#allocation18], 4294967024 }
 0x1c2   : > { %5445 = dma.done.wait (%p6721_p11), [#allocation21], 272   ;;  %p6722_p13 = pmov %p6709_p0 }
 0x1c4   : > { %5447 = vsyncadd (%p6722_p13), [#allocation21], 4294967024 }
 0x1c5   : > { %5449 = dma.done.wait (%p6709_p0), [#allocation24], 16   ;;  %p6723_p1 = pmov %p6709_p0 }
 0x1c6   : > { %p1040_p6 = scmp.lt.s32.totalorder %s5665_s3, 1  ;;  %v5488_v0 = vmov 0.0   ;;  %vm5489_vm0 = vmmov 0   ;;  %v4924_v1 = vld [vmem:[#allocation7] sm:$0xff]   ;;  %s6724_s5 = sld [smem:[#allocation43_spill]]  ;;  %v4925_v2 = vld [vmem:[#allocation2] sm:$0xff]   ;;  %v1136_v23 = vlaneseq }
 0x1c7   : > { %5451 = vsyncadd (%p6723_p1), [#allocation24], 4294967280  ;;  %4560 = vmatprep.subr.bf16.mxu1 %v5488_v0  ;;  %4552 = vmatprep.subr.bf16.mxu0 %v5488_v0  ;;  %v4926_v3 = vld [vmem:[#allocation7 + $0x8] sm:$0xff]   ;;  %vm1077_vm1 = vcmask 261120   ;;  %v4927_v5 = vld [vmem:[#allocation2 + $0x8] sm:$0xff]   ;;  %s5490_s26 = smov 104  }
 0x1c8   : > { %4564 = vmatprep.mubr.msk.bf16.mxu1 %vm5489_vm0, %v5488_v0  ;;  %s6075_s12 = scalar_select %p1040_p6, %s5665_s3, 1  ;;  %4556 = vmatprep.mubr.msk.bf16.mxu0 %vm5489_vm0, %v5488_v0  ;;  %v4405_v7 = vld [vmem:[#allocation8] ss:$0 sm:$0xff]  ;;  %v4399_v9 = vld [vmem:[#allocation5] ss:$0 sm:$0xff]  ;;  %v4928_v13 = vld [vmem:[#allocation10] sm:$0xff]  }
 0x1c9   : > { %4561 = vmatpush3.bf16.msra.mxu1 %v4924_v1  ;;  %4553 = vmatpush3.bf16.msra.mxu0 %v4925_v2  ;;  %s5491_s30 = smov 120   ;;  %v4929_v20 = vld [vmem:[#allocation10 + $0x8] sm:$0xff]   ;;  %s5492_s19 = smov 112   ;;  %v5493_v21 = vmov 1983009808   ;;  %v1137_v27 = vshrl.u32 %v1136_v23, 7 }
 0x1ca   : > { %s4396_s11 = sshll.u32 %s6075_s12, 3  ;;  %4562 = vmatprep.subr.bf16.mxu1 %v5488_v0  ;;  %4554 = vmatprep.subr.bf16.mxu0 %v5488_v0  ;;  %v1134_v22 = vunpack.c.l.s4 %v5493_v21  ;;  %v5494_v24 = vmov 1934713408   ;;  %vm1697_vm2 = vcmask 64512   ;;  %vm1933_vm3 = vcmask 1043456   ;;  %s5495_s0 = smov 16  }
 0x1cb   : > { %v1166_v25 = vunpack.c.l.s4 %v5494_v24  ;;  %s5496_s21 = smov 8   ;;  %s5497_s7 = smov 24   ;;  %vm2264_vm4 = vcmask 130048   ;;  %vm2266_vm5 = vcmask 195584   ;;  %vm4067_vm6 = vcmask 523264  }
 0x1cc   : > { %s1043_s1 = scalar_lea.vmem %s6724_s5, %s4396_s11  ;;  %v1135_v26 = vunpack.c.0.s8 %v1134_v22  ;;  %s4487_s28 = sshll.u32 %s6075_s12, 4 }
 0x1cd   : > { %v6084_v4 = vld [vmem:[%s1043_s1] sm:$0xff]  ;;  %4563 = vmatpush3.bf16.msra.mxu1 %v4926_v3  ;;  %4555 = vmatpush3.bf16.msra.mxu0 %v4927_v5  ;;  %v1167_v30 = vunpack.c.0.s8 %v1166_v25  ;;  %s6725_s9 = sld [smem:[#allocation44_spill]]  ;;  %s6726_s6 = sld [smem:[#allocation53_spill]] }
 0x1ce   : > { %v1053_v6 = vpack.c.bf16 %v6084_v4, %v6084_v4  ;;  %4576 = vmatprep.subr.bf16.mxu1 %v5488_v0  ;;  %4568 = vmatprep.subr.bf16.mxu0 %v5488_v0  ;;  %v6108_v31 = vsub.s32 %v1135_v26, %v1137_v27  ;;  %s6729_s2 = sld [smem:[#allocation36_spill]]  ;;  %s6732_s11 = sld [smem:[#allocation60_spill]] }
 0x1cf   : > { %v6110_v38 = vsub.s32 %v1167_v30, %v1137_v27 }
 0x1d0   : > { %4565 = vmatmul.mubr.msk.bf16.vlgmr.msra.gmra.mrb[0].mxu1 %vm1077_vm1, %v1053_v6  ;;  %4557 = vmatmul.mubr.msk.bf16.vlgmr.msra.gmra.mrb[0].mxu0 %vm1077_vm1, %v1053_v6 }
 0x1d1   : > { %4578 = vmatprep.mubr.msk.bf16.mxu1 %vm5489_vm0, %v5488_v0  ;;  %4572 = vmatprep.mubr.msk.bf16.mxu0 %vm5489_vm0, %v5488_v0 }
 0x1d2   : > { %4569 = vmatpush3.bf16.msra.mxu0 %v4928_v13 }
 0x1d3   : > { %4570 = vmatprep.subr.bf16.mxu0 %v5488_v0  ;;  %s1048_s8 = scalar_lea.vmem %s6725_s9, %s4487_s28  ;;  %s6730_s28 = sld [smem:[#allocation41_spill]] }
 0x1d4   : > { %s1037_s5 = sand.u32 1, %s6729_s2   ;;  %s6731_s9 = sld [smem:[#allocation59_spill]] }
 0x1d5   : > { %s4395_s1 = sshll.u32 %s1037_s5, 3  ;;  %s4143_s27 = scalar_lea.sflag [#allocation4], %s1037_s5 }
 0x1d6   : > { %4571 = vmatpush3.bf16.msra.mxu0 %v4929_v20 }
 0x1d7   : > { %4582 = vmatprep.subr.bf16.mxu0 %v5488_v0 }
 0x1d9   : > { %4573 = vmatmul.mubr.msk.bf16.vlgmr.msra.gmra.mrb[4].mxu0 %vm1077_vm1, %v1053_v6  ;;  %p6734_p9 = scmp.ne.s32.totalorder %s6730_s28, 0 }
 0x1da   : > { %4584 = vmatprep.mubr.msk.bf16.mxu0 %vm5489_vm0, %v5488_v0 }
 0x2a3   : > { %v1328_v8 = vpop.f32.mrb[0].mxu1  ;;  %v1115_v12 = vpop.f32.mrb[0].mxu0 }
 0x2a4   : > { %v1329_v10 = vadd.f32 %v4405_v7, %v1328_v8  ;;  %v4566_v11 = vpop.f32.mrb[1].mxu1  ;;  %v4558_v15 = vpop.f32.mrb[1].mxu0  ;;  %v1116_v17 = vadd.f32 %v4399_v9, %v1115_v12 }
 0x2a5   : > { %v1331_v14 = vpop.f32.mrb[2].mxu1  ;;  %v1118_v18 = vpop.f32.mrb[2].mxu0 }
 0x2a6   : > { %1341 = vrot.lane.b32.xlu1 %v1329_v10, %s5490_s26  ;;  %1335 = vrot.lane.b32.xlu0 %v1329_v10, %s5491_s30  ;;  %v4567_v16 = vpop.f32.mrb[3].mxu1  ;;  %v4559_v19 = vpop.f32.mrb[3].mxu0 }
 0x2aa   : > { %1338 = vrot.lane.b32.xlu0 %v1329_v10, %s5492_s19  ;;  %1122 = vrot.lane.b32.xlu1 %v1116_v17, %s5491_s30 }
 0x2ae   : > { %1125 = vrot.lane.b32.xlu0 %v1116_v17, %s5492_s19  ;;  %1128 = vrot.lane.b32.xlu1 %v1116_v17, %s5490_s26 }
 0x318   : > { %v1342_v28 = vpop.permute.xlu1 %1341  ;;  %v1336_v29 = vpop.permute.xlu0 %1335 }
 0x319   : > { %v1360_v32 = vcombine.low %v1336_v29, %v1342_v28  ;;  %v1361_v33 = vcombine.high %v1336_v29, %v1342_v28 }
 0x31b   : > { %v1368_v39 = vrot.slane %v1360_v32, %v6108_v31  ;;  %v1375_v40 = vrot.slane %v1361_v33, %v6108_v31 }
 0x31c   : > { %v1339_v34 = vpop.permute.xlu0 %1338  ;;  %v1123_v35 = vpop.permute.xlu1 %1122 }
 0x31d   : > { %v1344_v36 = vcombine.low %v1329_v10, %v1339_v34  ;;  %v1345_v37 = vcombine.high %v1329_v10, %v1339_v34 }
 0x31f   : > { %v1352_v41 = vrot.slane %v1344_v36, %v6108_v31  ;;  %v1359_v42 = vrot.slane %v1345_v37, %v6108_v31 }
 0x320   : > { %v1126_v43 = vpop.permute.xlu0 %1125  ;;  %v1129_v44 = vpop.permute.xlu1 %1128 }
 0x321   : > { %v1376_v45 = vcombine.low %v1352_v41, %v1368_v39  ;;  %v1377_v46 = vcombine.high %v1352_v41, %v1368_v39  ;;  %v1392_v47 = vcombine.low %v1359_v42, %v1375_v40  ;;  %v1393_v48 = vcombine.high %v1359_v42, %v1375_v40 }
 0x322   : > { %v1131_v49 = vcombine.low %v1116_v17, %v1126_v43  ;;  %v1132_v50 = vcombine.high %v1116_v17, %v1126_v43  ;;  %v1147_v51 = vcombine.low %v1123_v35, %v1129_v44  ;;  %v1148_v52 = vcombine.high %v1123_v35, %v1129_v44 }
 0x323   : > { %v1384_v53 = vrot.slane %v1376_v45, %v6110_v38  ;;  %v1391_v54 = vrot.slane %v1377_v46, %v6110_v38  ;;  %v1400_v55 = vrot.slane %v1392_v47, %v6110_v38  ;;  %v1407_v56 = vrot.slane %v1393_v48, %v6110_v38 }
 0x324   : > { %v1139_v57 = vrot.slane %v1131_v49, %v6108_v31  ;;  %v1146_v58 = vrot.slane %v1132_v50, %v6108_v31  ;;  %v1155_v59 = vrot.slane %v1147_v51, %v6108_v31  ;;  %v1162_v60 = vrot.slane %v1148_v52, %v6108_v31 }
 0x325   : > { %v1412_v61 = vcombine.low %v1384_v53, %v1391_v54  ;;  %v4409_v62 = vcombine.high %v1384_v53, %v1391_v54  ;;  %v1428_v63 = vcombine.low %v1400_v55, %v1407_v56  ;;  %v4410_v1 = vcombine.high %v1400_v55, %v1407_v56 }
 0x326   : > { %v1163_v2 = vcombine.low %v1139_v57, %v1155_v59  ;;  %v1164_v3 = vcombine.high %v1139_v57, %v1155_v59  ;;  %v1179_v5 = vcombine.low %v1146_v58, %v1162_v60  ;;  %v1180_v6 = vcombine.high %v1146_v58, %v1162_v60 }
 0x327   : > { %v1419_v7 = vrot.slane %v1412_v61, %v6108_v31  ;;  %v1427_v8 = vrot.slane %v4409_v62, %v6108_v31  ;;  %v1435_v9 = vrot.slane %v1428_v63, %v6108_v31  ;;  %v1443_v10 = vrot.slane %v4410_v1, %v6108_v31  ;;  %v1541_v61 = vpop.f32.mrb[4].mxu0 }
 0x328   : > { %v1171_v11 = vrot.slane %v1163_v2, %v6110_v38  ;;  %v1178_v12 = vrot.slane %v1164_v3, %v6110_v38  ;;  %v1187_v13 = vrot.slane %v1179_v5, %v6110_v38  ;;  %v1194_v14 = vrot.slane %v1180_v6, %v6110_v38  ;;  %v4574_v62 = vpop.f32.mrb[5].mxu0 }
 0x329   : > { %v1444_v15 = vcombine.low %v1419_v7, %v1427_v8  ;;  %v1460_v16 = vcombine.low %v1435_v9, %v1443_v10  ;;  %v1445_v17 = vcombine.high %v1419_v7, %v1427_v8  ;;  %v1461_v18 = vcombine.high %v1435_v9, %v1443_v10  ;;  %v1544_v63 = vpop.f32.mrb[6].mxu0 }
 0x32a   : > { %v1199_v19 = vcombine.low %v1171_v11, %v1178_v12  ;;  %v4403_v20 = vcombine.high %v1171_v11, %v1178_v12  ;;  %v1215_v21 = vcombine.low %v1187_v13, %v1194_v14  ;;  %v4404_v22 = vcombine.high %v1187_v13, %v1194_v14  ;;  %v4575_v1 = vpop.f32.mrb[7].mxu0 }
 0x32b   : > { %v1452_v23 = vrot.slane %v1444_v15, %v6110_v38  ;;  %v1468_v24 = vrot.slane %v1460_v16, %v6110_v38  ;;  %v1459_v32 = vrot.slane %v1445_v17, %v6110_v38  ;;  %v1475_v33 = vrot.slane %v1461_v18, %v6110_v38 }
 0x32c   : > { %v1206_v25 = vrot.slane %v1199_v19, %v6108_v31  ;;  %v1214_v26 = vrot.slane %v4403_v20, %v6108_v31  ;;  %v1222_v27 = vrot.slane %v1215_v21, %v6108_v31  ;;  %v1230_v28 = vrot.slane %v4404_v22, %v6108_v31 }
 0x32d   : > { %v1476_v29 = vcombine.low %v1452_v23, %v1468_v24  ;;  %v1477_v30 = vcombine.high %v1452_v23, %v1468_v24  ;;  %v1478_v43 = vcombine.low %v1459_v32, %v1475_v33  ;;  %v1479_v44 = vcombine.high %v1459_v32, %v1475_v33  ;;  %v4411_v23 = vld [vmem:[#allocation11] ss:$0 sm:$0xff] }
 0x32e   : > { %v1231_v34 = vcombine.low %v1206_v25, %v1214_v26  ;;  %v1247_v35 = vcombine.low %v1222_v27, %v1230_v28  ;;  %v1232_v45 = vcombine.high %v1206_v25, %v1214_v26  ;;  %v1248_v46 = vcombine.high %v1222_v27, %v1230_v28 }
 0x32f   : > { %v1480_v36 = vpack.c.bf16 %v1476_v29, %v1476_v29  ;;  %v1481_v37 = vpack.c.bf16 %v1477_v30, %v1477_v30  ;;  %v1482_v49 = vpack.c.bf16 %v1478_v43, %v1478_v43  ;;  %v1483_v50 = vpack.c.bf16 %v1479_v44, %v1479_v44 }
 0x330   : > { %v1239_v39 = vrot.slane %v1231_v34, %v6110_v38  ;;  %v1255_v40 = vrot.slane %v1247_v35, %v6110_v38  ;;  %v1246_v53 = vrot.slane %v1232_v45, %v6110_v38  ;;  %v1262_v54 = vrot.slane %v1248_v46, %v6110_v38 }
 0x331   : > { %v1702_v41 = vsel %vm1697_vm2, %v1480_v36, 0  ;;  %v1748_v42 = vsel %vm1697_vm2, %v1481_v37, 0  ;;  %v1794_v55 = vsel %vm1697_vm2, %v1482_v49, 0  ;;  %v1840_v56 = vsel %vm1697_vm2, %v1483_v50, 0 }
 0x332   : > { %4577 = vmatpush3.bf16.xpose.msra.mxu1 %v1702_v41  ;;  %4583 = vmatpush3.bf16.xpose.msra.mxu0 %v1748_v42  ;;  %v1263_v47 = vcombine.low %v1239_v39, %v1255_v40  ;;  %v1264_v48 = vcombine.high %v1239_v39, %v1255_v40  ;;  %v1265_v57 = vcombine.low %v1246_v53, %v1262_v54 }
 0x333   : > { %4588 = vmatprep.subr.bf16.mxu1 %v5488_v0  ;;  %4594 = vmatprep.subr.bf16.mxu0 %v5488_v0  ;;  %v1266_v58 = vcombine.high %v1246_v53, %v1262_v54  ;;  %v1542_v24 = vadd.f32 %v4411_v23, %v1541_v61 }
 0x334   : > { %v1267_v51 = vpack.c.bf16 %v1263_v47, %v1263_v47  ;;  %v1268_v52 = vpack.c.bf16 %v1264_v48, %v1264_v48  ;;  %v1269_v59 = vpack.c.bf16 %v1265_v57, %v1265_v57 }
 0x335   : > { %v1270_v60 = vpack.c.bf16 %v1266_v58, %v1266_v58 }
 0x339   : > { %4579 = vmatmul.mubr.msk.bf16.vlgmr.msra.gmra.mrb[4].mxu1 %vm1697_vm2, %v1267_v51  ;;  %4585 = vmatmul.mubr.msk.bf16.vlgmr.msra.gmra.mrb[8].mxu0 %vm1697_vm2, %v1268_v52 }
 0x33a   : > { %4589 = vmatpush3.bf16.xpose.msra.mxu1 %v1794_v55  ;;  %4595 = vmatpush3.bf16.xpose.msra.mxu0 %v1840_v56 }
 0x33b   : > { %4590 = vmatprep.mubr.msk.bf16.mxu1 %vm5489_vm0, %v5488_v0  ;;  %4596 = vmatprep.mubr.msk.bf16.mxu0 %vm5489_vm0, %v5488_v0 }
 0x33c   : > { %4600 = vmatprep.subr.bf16.mxu1 %v5488_v0  ;;  %4606 = vmatprep.subr.bf16.mxu0 %v5488_v0 }
 0x341   : > { %4591 = vmatmul.mubr.msk.bf16.vlgmr.msra.gmra.mrb[8].mxu1 %vm1697_vm2, %v1269_v59  ;;  %4597 = vmatmul.mubr.msk.bf16.vlgmr.msra.gmra.mrb[12].mxu0 %vm1697_vm2, %v1270_v60 }
 0x342   : > { %4602 = vmatprep.mubr.msk.bf16.mxu1 %vm5489_vm0, %v5488_v0  ;;  %4608 = vmatprep.mubr.msk.bf16.mxu0 %vm5489_vm0, %v5488_v0 }
 0x40c   : > { %v1738_v2 = vpop.f32.mrb[4].mxu1  ;;  %v1784_v3 = vpop.f32.mrb[8].mxu0 }
 0x40d   : > { %v4580_v5 = vpop.f32.mrb[5].mxu1  ;;  %v4586_v6 = vpop.f32.mrb[9].mxu0  ;;  %v1882_v7 = vsel %vm1697_vm2, %v1738_v2, -inf  ;;  %v1885_v8 = vsel %vm1697_vm2, %v1784_v3, -inf }
 0x40e   : > { %1883 = vmax.xlane.f32.xlu0 %v1882_v7  ;;  %v1741_v9 = vpop.f32.mrb[6].mxu1  ;;  %1886 = vmax.xlane.f32.xlu1 %v1885_v8  ;;  %v1787_v10 = vpop.f32.mrb[10].mxu0 }
 0x40f   : > { %v4581_v11 = vpop.f32.mrb[7].mxu1  ;;  %v4587_v12 = vpop.f32.mrb[11].mxu0 }
 0x414   : > { %v1830_v13 = vpop.f32.mrb[8].mxu1  ;;  %v1876_v14 = vpop.f32.mrb[12].mxu0 }
 0x415   : > { %v4592_v15 = vpop.f32.mrb[9].mxu1  ;;  %v4598_v16 = vpop.f32.mrb[13].mxu0  ;;  %v1888_v17 = vsel %vm1697_vm2, %v1830_v13, -inf  ;;  %v1891_v22 = vsel %vm1697_vm2, %v1876_v14, -inf }
 0x416   : > { %1889 = vmax.xlane.f32.xlu0 %v1888_v17  ;;  %v1833_v18 = vpop.f32.mrb[10].mxu1  ;;  %v1879_v19 = vpop.f32.mrb[14].mxu0 }
 0x417   : > { %v4593_v20 = vpop.f32.mrb[11].mxu1  ;;  %v4599_v21 = vpop.f32.mrb[15].mxu0 }
 0x41a   : > { %1892 = vmax.xlane.f32.xlu0 %v1891_v22 }
 0x41f   : > { %1548 = vrot.lane.b32.xlu1 %v1542_v24, %s5491_s30 }
 0x49b   : > { %v1884_v25 = vpop.xlane.xlu0 %1883  ;;  %v1887_v26 = vpop.xlane.xlu1 %1886 }
 0x49c   : > { %v1894_v27 = vsub.f32 %v1738_v2, %v1884_v25  ;;  %v1895_v28 = vsub.f32 %v1784_v3, %v1887_v26 }
 0x49e   : > { %v1898_v29 = vmul.f32 1.442695, %v1894_v27  ;;  %v1900_v30 = vmul.f32 1.442695, %v1895_v28 }
 0x49f   : > { %v1549_v47 = vpop.permute.xlu1 %1548 }
 0x4a0   : > { %4946 = vpow2.f32 %v1898_v29 }
 0x4a1   : > { %4948 = vpow2.f32 %v1900_v30 }
 0x4a3   : > { %v1890_v36 = vpop.xlane.xlu0 %1889 }
 0x4a4   : > { %v1896_v39 = vsub.f32 %v1830_v13, %v1890_v36 }
 0x4a6   : > { %v1902_v41 = vmul.f32 1.442695, %v1896_v39 }
 0x4a7   : > { %v1893_v37 = vpop.xlane.xlu0 %1892 }
 0x4a8   : > { %v1897_v40 = vsub.f32 %v1876_v14, %v1893_v37  ;;  %4950 = vpow2.f32 %v1902_v41 }
 0x4aa   : > { %v6169_v32 = vpop.eup %4946  ;;  %v1904_v42 = vmul.f32 1.442695, %v1897_v40 }
 0x4ab   : > { %v6171_v33 = vpop.eup %4948  ;;  %v1906_v34 = vsel %vm1697_vm2, %v6169_v32, 0.0 }
 0x4ac   : > { %1907 = vadd.xlane.f32.xlu1 %v1906_v34  ;;  %v1909_v35 = vsel %vm1697_vm2, %v6171_v33, 0.0  ;;  %4952 = vpow2.f32 %v1904_v42 }
 0x4ad   : > { %1910 = vadd.xlane.f32.xlu0 %v1909_v35 }
 0x4b2   : > { %v6179_v43 = vpop.eup %4950 }
 0x4b3   : > { %v1912_v45 = vsel %vm1697_vm2, %v6179_v43, 0.0 }
 0x4b6   : > { %v6181_v44 = vpop.eup %4952 }
 0x4b7   : > { %v1915_v46 = vsel %vm1697_vm2, %v6181_v44, 0.0 }
 0x4bd   : > { %1554 = vrot.lane.b32.xlu1 %v1542_v24, %s5490_s26 }
 0x4c3   : > { %1551 = vrot.lane.b32.xlu0 %v1542_v24, %s5492_s19 }
 0x4e1   : > { %1913 = vadd.xlane.f32.xlu1 %v1912_v45 }
 0x4e2   : > { %1916 = vadd.xlane.f32.xlu0 %v1915_v46 }
 0x539   : > { %v1908_v48 = vpop.xlane.xlu1 %1907 }
 0x53a   : > { %v1911_v49 = vpop.xlane.xlu0 %1910  ;;  %4954 = vrcp.f32 %v1908_v48 }
 0x53b   : > { %4956 = vrcp.f32 %v1911_v49 }
 0x53d   : > { %v1555_v50 = vpop.permute.xlu1 %1554 }
 0x53e   : > { %v1573_v51 = vcombine.low %v1549_v47, %v1555_v50  ;;  %v1574_v52 = vcombine.high %v1549_v47, %v1555_v50  ;;  %v1552_v53 = vpop.permute.xlu0 %1551 }
 0x53f   : > { %v1557_v54 = vcombine.low %v1542_v24, %v1552_v53  ;;  %v1558_v55 = vcombine.high %v1542_v24, %v1552_v53 }
 0x540   : > { %v1581_v56 = vrot.slane %v1573_v51, %v6108_v31  ;;  %v1588_v57 = vrot.slane %v1574_v52, %v6108_v31 }
 0x541   : > { %v1565_v58 = vrot.slane %v1557_v54, %v6108_v31  ;;  %v1572_v59 = vrot.slane %v1558_v55, %v6108_v31 }
 0x543   : > { %v1589_v60 = vcombine.low %v1565_v58, %v1581_v56  ;;  %v1590_v61 = vcombine.high %v1565_v58, %v1581_v56  ;;  %v1605_v62 = vcombine.low %v1572_v59, %v1588_v57  ;;  %v1606_v63 = vcombine.high %v1572_v59, %v1588_v57 }
 0x544   : > { %v4955_v20 = vpop.eup %4954 }
 0x545   : > { %v1597_v1 = vrot.slane %v1589_v60, %v6110_v38  ;;  %v1604_v2 = vrot.slane %v1590_v61, %v6110_v38  ;;  %v1613_v3 = vrot.slane %v1605_v62, %v6110_v38  ;;  %v1620_v5 = vrot.slane %v1606_v63, %v6110_v38  ;;  %v4957_v23 = vpop.eup %4956 }
 0x546   : > { %v1922_v28 = vmul.f32 %v4955_v20, %v6169_v32  ;;  %v1923_v29 = vmul.f32 %v4957_v23, %v6171_v33 }
 0x547   : > { %v1625_v6 = vcombine.low %v1597_v1, %v1604_v2  ;;  %v4415_v7 = vcombine.high %v1597_v1, %v1604_v2  ;;  %v1641_v8 = vcombine.low %v1613_v3, %v1620_v5  ;;  %v4416_v9 = vcombine.high %v1613_v3, %v1620_v5 }
 0x548   : > { %v1926_v40 = vpack.c.bf16 %v1922_v28, %v1922_v28  ;;  %v1927_v41 = vpack.c.bf16 %v1923_v29, %v1923_v29 }
 0x549   : > { %v1632_v10 = vrot.slane %v1625_v6, %v6108_v31  ;;  %v1640_v11 = vrot.slane %v4415_v7, %v6108_v31  ;;  %v1648_v12 = vrot.slane %v1641_v8, %v6108_v31  ;;  %v1656_v13 = vrot.slane %v4416_v9, %v6108_v31 }
 0x54b   : > { %v1657_v14 = vcombine.low %v1632_v10, %v1640_v11  ;;  %v1658_v15 = vcombine.high %v1632_v10, %v1640_v11  ;;  %v1673_v16 = vcombine.low %v1648_v12, %v1656_v13  ;;  %v1674_v17 = vcombine.high %v1648_v12, %v1656_v13 }
 0x54d   : > { %v1665_v18 = vrot.slane %v1657_v14, %v6110_v38  ;;  %v1672_v19 = vrot.slane %v1658_v15, %v6110_v38  ;;  %v1681_v21 = vrot.slane %v1673_v16, %v6110_v38  ;;  %v1688_v22 = vrot.slane %v1674_v17, %v6110_v38  ;;  %v4930_v16 = vld [vmem:[#allocation13] sm:$0xff]  }
 0x54f   : > { %v1689_v24 = vcombine.low %v1665_v18, %v1681_v21  ;;  %v1690_v25 = vcombine.high %v1665_v18, %v1681_v21  ;;  %v1691_v26 = vcombine.low %v1672_v19, %v1688_v22  ;;  %v1692_v27 = vcombine.high %v1672_v19, %v1688_v22 }
 0x551   : > { %v1693_v30 = vpack.c.bf16 %v1689_v24, %v1689_v24  ;;  %v1694_v34 = vpack.c.bf16 %v1690_v25, %v1690_v25  ;;  %v1695_v37 = vpack.c.bf16 %v1691_v26, %v1691_v26  ;;  %v1696_v39 = vpack.c.bf16 %v1692_v27, %v1692_v27  ;;  %v4931_v25 = vld [vmem:[#allocation13 + $0x8] sm:$0xff]  }
 0x553   : > { %v1935_v35 = vsel %vm1933_vm3, %v1693_v30, 0  ;;  %v1981_v36 = vsel %vm1933_vm3, %v1694_v34, 0  ;;  %v2027_v32 = vsel %vm1933_vm3, %v1695_v37, 0  ;;  %v2073_v33 = vsel %vm1933_vm3, %v1696_v39, 0 }
 0x554   : > { %4601 = vmatpush3.bf16.msra.mxu1 %v1935_v35  ;;  %4607 = vmatpush3.bf16.msra.mxu0 %v1981_v36 }
 0x555   : > { %4612 = vmatprep.subr.bf16.mxu1 %v5488_v0  ;;  %4618 = vmatprep.subr.bf16.mxu0 %v5488_v0 }
 0x557   : > { %4603 = vmatmul.mubr.msk.bf16.vlgmr.msra.gmra.mrb[12].mxu1 %vm1697_vm2, %v1926_v40  ;;  %4609 = vmatmul.mubr.msk.bf16.vlgmr.msra.gmra.mrb[16].mxu0 %vm1697_vm2, %v1927_v41 }
 0x558   : > { %4613 = vmatpush3.bf16.msra.mxu1 %v2027_v32  ;;  %4619 = vmatpush3.bf16.msra.mxu0 %v2073_v33 }
 0x559   : > { %4614 = vmatprep.mubr.msk.bf16.mxu1 %vm5489_vm0, %v5488_v0  ;;  %4620 = vmatprep.mubr.msk.bf16.mxu0 %vm5489_vm0, %v5488_v0 }
 0x55a   : > { %4624 = vmatprep.subr.bf16.mxu1 %v5488_v0  ;;  %4632 = vmatprep.subr.bf16.mxu0 %v5488_v0 }
 0x56e   : > { %v1914_v42 = vpop.xlane.xlu1 %1913 }
 0x56f   : > { %4958 = vrcp.f32 %v1914_v42  ;;  %v1917_v45 = vpop.xlane.xlu0 %1916 }
 0x570   : > { %4960 = vrcp.f32 %v1917_v45 }
 0x579   : > { %v4959_v46 = vpop.eup %4958 }
 0x57a   : > { %v4961_v47 = vpop.eup %4960  ;;  %v1924_v48 = vmul.f32 %v4959_v46, %v6179_v43 }
 0x57b   : > { %v1925_v49 = vmul.f32 %v4961_v47, %v6181_v44 }
 0x57c   : > { %v1928_v50 = vpack.c.bf16 %v1924_v48, %v1924_v48 }
 0x57d   : > { %v1929_v51 = vpack.c.bf16 %v1925_v49, %v1925_v49 }
 0x57e   : > { %4615 = vmatmul.mubr.msk.bf16.vlgmr.msra.gmra.mrb[16].mxu1 %vm1697_vm2, %v1928_v50 }
 0x57f   : > { %4621 = vmatmul.mubr.msk.bf16.vlgmr.msra.gmra.mrb[20].mxu0 %vm1697_vm2, %v1929_v51  ;;  %4628 = vmatprep.mubr.msk.bf16.mxu1 %vm5489_vm0, %v5488_v0 }
 0x580   : > { %4636 = vmatprep.mubr.msk.bf16.mxu0 %vm5489_vm0, %v5488_v0  ;;  %4625 = vmatpush3.bf16.msra.mxu1 %v4930_v16 }
 0x581   : > { %4626 = vmatprep.subr.bf16.mxu1 %v5488_v0 }
 0x584   : > { %4627 = vmatpush3.bf16.msra.mxu1 %v4931_v25 }
 0x585   : > { %4640 = vmatprep.subr.bf16.mxu1 %v5488_v0 }
 0x62a   : > { %v1971_v52 = vpop.f32.mrb[12].mxu1  ;;  %v2017_v53 = vpop.f32.mrb[16].mxu0 }
 0x62b   : > { %v4604_v54 = vpop.f32.mrb[13].mxu1  ;;  %v4610_v55 = vpop.f32.mrb[17].mxu0 }
 0x62c   : > { %v1974_v56 = vpop.f32.mrb[14].mxu1  ;;  %v2020_v43 = vpop.f32.mrb[18].mxu0 }
 0x62d   : > { %v4605_v57 = vpop.f32.mrb[15].mxu1  ;;  %v4611_v44 = vpop.f32.mrb[19].mxu0 }
 0x651   : > { %v2063_v58 = vpop.f32.mrb[16].mxu1 }
 0x652   : > { %v2115_v59 = vcombine.low %v1971_v52, %v2063_v58  ;;  %v2116_v60 = vcombine.high %v1971_v52, %v2063_v58  ;;  %v2109_v61 = vpop.f32.mrb[20].mxu0  ;;  %v4616_v62 = vpop.f32.mrb[17].mxu1 }
 0x653   : > { %v2131_v63 = vcombine.low %v2017_v53, %v2109_v61  ;;  %v2132_v1 = vcombine.high %v2017_v53, %v2109_v61  ;;  %v4622_v2 = vpop.f32.mrb[21].mxu0  ;;  %v2066_v3 = vpop.f32.mrb[18].mxu1  ;;  %v4427_v53 = vld [vmem:[#allocation14] ss:$0 sm:$0xff]  ;;  %v1052_v62 = vld [vmem:[%s1048_s8 + $0x8] sm:$0xff] }
 0x654   : > { %v2123_v5 = vrot.slane %v2115_v59, %v6108_v31  ;;  %v2130_v6 = vrot.slane %v2116_v60, %v6108_v31  ;;  %v2112_v7 = vpop.f32.mrb[22].mxu0  ;;  %v4617_v8 = vpop.f32.mrb[19].mxu1  ;;  %v4932_v59 = vld [vmem:[#allocation17] sm:$0xff]   ;;  %v4933_v60 = vld [vmem:[#allocation17 + $0x8] sm:$0xff]   ;;  %v1051_v61 = vld [vmem:[%s1048_s8] sm:$0xff] }
 0x655   : > { %v2139_v9 = vrot.slane %v2131_v63, %v6108_v31  ;;  %v2146_v10 = vrot.slane %v2132_v1, %v6108_v31  ;;  %v4623_v11 = vpop.f32.mrb[23].mxu0  ;;  %v6261_v63 = vpack.c.bf16 %v1052_v62, %v1051_v61  ;;  %v4935_v7 = vld [vmem:[%s6726_s6 + $0x8] sm:$0xff]   ;;  %v4439_v8 = vld [vmem:[#allocation19] ss:$0 sm:$0xff] }
 0x657   : > { %v2147_v12 = vcombine.low %v2123_v5, %v2139_v9  ;;  %v2148_v13 = vcombine.high %v2123_v5, %v2139_v9  ;;  %v2163_v14 = vcombine.low %v2130_v6, %v2146_v10  ;;  %v2164_v15 = vcombine.high %v2130_v6, %v2146_v10  ;;  %v4934_v6 = vld [vmem:[%s6726_s6] sm:$0xff]  }
 0x658   : > { %4633 = vmatpush3.bf16.msra.mxu0 %v4934_v6 }
 0x659   : > { %v2155_v17 = vrot.slane %v2147_v12, %v6110_v38  ;;  %v2162_v18 = vrot.slane %v2148_v13, %v6110_v38  ;;  %v2171_v19 = vrot.slane %v2163_v14, %v6110_v38  ;;  %v2178_v20 = vrot.slane %v2164_v15, %v6110_v38  ;;  %4634 = vmatprep.subr.bf16.mxu0 %v5488_v0 }
 0x65b   : > { %v2183_v21 = vcombine.low %v2155_v17, %v2162_v18  ;;  %v4425_v22 = vcombine.high %v2155_v17, %v2162_v18  ;;  %v2199_v23 = vcombine.low %v2171_v19, %v2178_v20  ;;  %v4426_v24 = vcombine.high %v2171_v19, %v2178_v20  ;;  %v4431_v19 = vld [vmem:[%s6620_s22] ss:$0 sm:$0xff] }
 0x65c   : > { %4635 = vmatpush3.bf16.msra.mxu0 %v4935_v7 }
 0x65d   : > { %v2190_v26 = vrot.slane %v2183_v21, %v6108_v31  ;;  %v2198_v27 = vrot.slane %v4425_v22, %v6108_v31  ;;  %v2206_v28 = vrot.slane %v2199_v23, %v6108_v31  ;;  %v2214_v29 = vrot.slane %v4426_v24, %v6108_v31  ;;  %4648 = vmatprep.subr.bf16.mxu0 %v5488_v0  ;;  %v4432_v21 = vld [vmem:[%s6621_s23] ss:$0 sm:$0xff] }
 0x65e   : > { %v4936_v24 = vld [vmem:[%s6612_s14] sm:$0xff]  }
 0x65f   : > { %v2216_v30 = vcombine.high %v2190_v26, %v2198_v27  ;;  %v2232_v34 = vcombine.high %v2206_v28, %v2214_v29  ;;  %v2215_v35 = vcombine.low %v2190_v26, %v2198_v27  ;;  %v2231_v36 = vcombine.low %v2206_v28, %v2214_v29 }
 0x661   : > { %v2230_v37 = vrot.slane %v2216_v30, %v6110_v38  ;;  %v2246_v39 = vrot.slane %v2232_v34, %v6110_v38  ;;  %v2223_v40 = vrot.slane %v2215_v35, %v6110_v38  ;;  %v2239_v41 = vrot.slane %v2231_v36, %v6110_v38 }
 0x663   : > { %v2249_v32 = vcombine.low %v2230_v37, %v2246_v39  ;;  %v2248_v33 = vcombine.high %v2223_v40, %v2239_v41  ;;  %v2250_v42 = vcombine.high %v2230_v37, %v2246_v39  ;;  %v2247_v45 = vcombine.low %v2223_v40, %v2239_v41 }
 0x665   : > { %2256 = vrot.lane.b32.xlu1 %v2249_v32, %s5495_s0  ;;  %2252 = vrot.lane.b32.xlu0 %v2248_v33, %s5496_s21 }
 0x669   : > { %2260 = vrot.lane.b32.xlu1 %v2250_v42, %s5497_s7 }
 0x6d7   : > { %v2257_v46 = vpop.permute.xlu1 %2256  ;;  %v2253_v47 = vpop.permute.xlu0 %2252 }
 0x6d8   : > { %v2263_v48 = vsel %vm1697_vm2, %v2247_v45, %v2253_v47 }
 0x6d9   : > { %v2265_v50 = vsel %vm2264_vm4, %v2263_v48, %v2257_v46 }
 0x6db   : > { %v2261_v49 = vpop.permute.xlu1 %2260 }
 0x6dc   : > { %v2267_v51 = vsel %vm2266_vm5, %v2265_v50, %v2261_v49 }
 0x6dd   : > { %v2268_v52 = vpack.c.bf16 %v2267_v51, %v2267_v51 }
 0x6df   : > { %4629 = vmatmul.mubr.msk.bf16.vlgmr.msra.gmra.mrb[20].mxu1 %vm1077_vm1, %v2268_v52 }
 0x6e0   : > { %4644 = vmatprep.mubr.msk.bf16.mxu1 %vm5489_vm0, %v5488_v0  ;;  %4641 = vmatpush3.bf16.msra.mxu1 %v4932_v59 }
 0x6e1   : > { %4642 = vmatprep.subr.bf16.mxu1 %v5488_v0 }
 0x6e4   : > { %4643 = vmatpush3.bf16.msra.mxu1 %v4933_v60 }
 0x6e5   : > { %4656 = vmatprep.subr.bf16.mxu1 %v5488_v0 }
 0x6e7   : > { %4645 = vmatmul.mubr.msk.bf16.vlgmr.msra.gmra.mrb[24].mxu1 %vm1077_vm1, %v6261_v63 }
 0x6e8   : > { %4658 = vmatprep.mubr.msk.bf16.mxu1 %vm5489_vm0, %v5488_v0 }
 0x7b2   : > { %v2329_v54 = vpop.f32.mrb[20].mxu1 }
 0x7b3   : > { %v2330_v55 = vadd.f32 %v4427_v53, %v2329_v54  ;;  %v4630_v56 = vpop.f32.mrb[21].mxu1 }
 0x7b4   : > { %v2332_v43 = vpop.f32.mrb[22].mxu1 }
 0x7b5   : > { %v4631_v57 = vpop.f32.mrb[23].mxu1  ;;  %v2335_v44 = vadd.f32 %v2330_v55, %v6084_v4 }
 0x7b7   : > { %v2336_v58 = vsel %vm1077_vm1, %v2335_v44, 0.0 }
 0x7b8   : > { %2337 = vadd.xlane.f32.xlu0 %v2336_v58 }
 0x7ba   : > { %v2644_v9 = vpop.f32.mrb[24].mxu1 }
 0x7bb   : > { %v2645_v10 = vadd.f32 %v4439_v8, %v2644_v9  ;;  %v4646_v11 = vpop.f32.mrb[25].mxu1 }
 0x7bc   : > { %v2647_v12 = vpop.f32.mrb[26].mxu1 }
 0x7bd   : > { %v2648_v13 = vadd.f32 %v4439_v8, %v2647_v12  ;;  %v4647_v14 = vpop.f32.mrb[27].mxu1 }
 0x7ce   : > { %2653 = vrot.lane.b32.xlu0 %v2645_v10, %s5491_s30 }
 0x7d2   : > { %2659 = vrot.lane.b32.xlu0 %v2645_v10, %s5492_s19 }
 0x7d6   : > { %2665 = vrot.lane.b32.xlu0 %v2645_v10, %s5490_s26 }
 0x845   : > { %v2338_v4 = vpop.xlane.xlu0 %2337 }
 0x846   : > { %v2340_v1 = vmul.f32 0.03125, %v2338_v4 }
 0x848   : > { %v2341_v2 = vsub.f32 %v2335_v44, %v2340_v1 }
 0x849   : > { %v2654_v26 = vpop.permute.xlu0 %2653 }
 0x84a   : > { %v2342_v3 = vmul.f32 %v2341_v2, %v2341_v2 }
 0x84c   : > { %v2343_v5 = vsel %vm1077_vm1, %v2342_v3, 0.0 }
 0x84d   : > { %2344 = vadd.xlane.f32.xlu1 %v2343_v5  ;;  %v2660_v28 = vpop.permute.xlu0 %2659 }
 0x84e   : > { %v2671_v35 = vcombine.low %v2645_v10, %v2660_v28  ;;  %v2672_v36 = vcombine.high %v2645_v10, %v2660_v28 }
 0x850   : > { %v2679_v42 = vrot.slane %v2671_v35, %v6108_v31  ;;  %v2686_v45 = vrot.slane %v2672_v36, %v6108_v31 }
 0x851   : > { %v2666_v30 = vpop.permute.xlu0 %2665 }
 0x852   : > { %v2687_v37 = vcombine.low %v2654_v26, %v2666_v30  ;;  %v2688_v39 = vcombine.high %v2654_v26, %v2666_v30 }
 0x854   : > { %v2695_v46 = vrot.slane %v2687_v37, %v6108_v31  ;;  %v2702_v47 = vrot.slane %v2688_v39, %v6108_v31 }
 0x856   : > { %v2703_v52 = vcombine.low %v2679_v42, %v2695_v46  ;;  %v2704_v53 = vcombine.high %v2679_v42, %v2695_v46  ;;  %v2719_v54 = vcombine.low %v2686_v45, %v2702_v47  ;;  %v2720_v55 = vcombine.high %v2686_v45, %v2702_v47 }
 0x858   : > { %v2711_v58 = vrot.slane %v2703_v52, %v6110_v38  ;;  %v2718_v59 = vrot.slane %v2704_v53, %v6110_v38  ;;  %v2727_v60 = vrot.slane %v2719_v54, %v6110_v38  ;;  %v2734_v61 = vrot.slane %v2720_v55, %v6110_v38  ;;  %v4433_v55 = vld [vmem:[#allocation16] ss:$0 sm:$0xff] }
 0x85a   : > { %v2807_v3 = vcombine.low %v2711_v58, %v2718_v59  ;;  %v4443_v5 = vcombine.high %v2711_v58, %v2718_v59  ;;  %v2823_v6 = vcombine.low %v2727_v60, %v2734_v61  ;;  %v4444_v7 = vcombine.high %v2727_v60, %v2734_v61  ;;  %v4447_v59 = vld [vmem:[#allocation20] ss:$0 sm:$0xff] }
 0x85c   : > { %v2814_v12 = vrot.slane %v2807_v3, %v6108_v31  ;;  %v2830_v14 = vrot.slane %v2823_v6, %v6108_v31 }
 0x85e   : > { %2655 = vrot.lane.b32.xlu1 %v2648_v13, %s5491_s30 }
 0x862   : > { %2661 = vrot.lane.b32.xlu1 %v2648_v13, %s5492_s19 }
 0x866   : > { %2667 = vrot.lane.b32.xlu1 %v2648_v13, %s5490_s26 }
 0x8da   : > { %v2345_v15 = vpop.xlane.xlu1 %2344 }
 0x8db   : > { %v2346_v16 = vmul.f32 0.03125, %v2345_v15  ;;  %v2838_v15 = vrot.slane %v4444_v7, %v6108_v31 }
 0x8dd   : > { %v2347_v17 = vadd.f32 1e-05, %v2346_v16 }
 0x8de   : > { %v2656_v27 = vpop.permute.xlu1 %2655 }
 0x8df   : > { %4962 = vrsqrt.f32 %v2347_v17 }
 0x8e2   : > { %v2662_v29 = vpop.permute.xlu1 %2661 }
 0x8e3   : > { %v2739_v40 = vcombine.low %v2648_v13, %v2662_v29  ;;  %v2740_v41 = vcombine.high %v2648_v13, %v2662_v29  ;;  %v2822_v13 = vrot.slane %v4443_v5, %v6108_v31 }
 0x8e5   : > { %v2747_v48 = vrot.slane %v2739_v40, %v6108_v31  ;;  %v2754_v49 = vrot.slane %v2740_v41, %v6108_v31  ;;  %v2840_v26 = vcombine.high %v2814_v12, %v2822_v13 }
 0x8e6   : > { %v2668_v34 = vpop.permute.xlu1 %2667 }
 0x8e7   : > { %v2755_v32 = vcombine.low %v2656_v27, %v2668_v34  ;;  %v2756_v33 = vcombine.high %v2656_v27, %v2668_v34  ;;  %v2856_v27 = vcombine.high %v2830_v14, %v2838_v15  ;;  %v2854_v37 = vrot.slane %v2840_v26, %v6110_v38 }
 0x8e9   : > { %v4963_v18 = vpop.eup %4962  ;;  %v2763_v50 = vrot.slane %v2755_v32, %v6108_v31  ;;  %v2770_v51 = vrot.slane %v2756_v33, %v6108_v31  ;;  %v2870_v39 = vrot.slane %v2856_v27, %v6110_v38 }
 0x8ea   : > { %v2349_v20 = vmul.f32 %v4963_v18, %v2341_v2 }
 0x8eb   : > { %v2771_v56 = vcombine.low %v2747_v48, %v2763_v50  ;;  %v2772_v43 = vcombine.high %v2747_v48, %v2763_v50  ;;  %v2787_v57 = vcombine.low %v2754_v49, %v2770_v51  ;;  %v2788_v44 = vcombine.high %v2754_v49, %v2770_v51 }
 0x8ec   : > { %v2357_v22 = vmul.f32 %v4431_v19, %v2349_v20  ;;  %v4937_v20 = vld [vmem:[%s6612_s14 + $0x8] sm:$0xff]   ;;  %v2873_v46 = vcombine.low %v2854_v37, %v2870_v39  ;;  %v2874_v48 = vcombine.high %v2854_v37, %v2870_v39 }
 0x8ed   : > { %v2779_v62 = vrot.slane %v2771_v56, %v6110_v38  ;;  %v2786_v4 = vrot.slane %v2772_v43, %v6110_v38  ;;  %v2795_v1 = vrot.slane %v2787_v57, %v6110_v38  ;;  %v2802_v2 = vrot.slane %v2788_v44, %v6110_v38 }
 0x8ee   : > { %v6289_v23 = vadd.f32 %v4432_v21, %v2357_v22  ;;  %v2839_v21 = vcombine.low %v2814_v12, %v2822_v13  ;;  %v2855_v22 = vcombine.low %v2830_v14, %v2838_v15 }
 0x8ef   : > { %v2875_v8 = vcombine.low %v2779_v62, %v2786_v4  ;;  %v4445_v9 = vcombine.high %v2779_v62, %v2786_v4  ;;  %v2891_v10 = vcombine.low %v2795_v1, %v2802_v2  ;;  %v4446_v11 = vcombine.high %v2795_v1, %v2802_v2 }
 0x8f0   : > { %v2366_v25 = vpack.c.bf16 %v6289_v23, %v6289_v23  ;;  %v2847_v30 = vrot.slane %v2839_v21, %v6110_v38  ;;  %v2863_v34 = vrot.slane %v2855_v22, %v6110_v38 }
 0x8f1   : > { %v2882_v16 = vrot.slane %v2875_v8, %v6108_v31  ;;  %v2890_v17 = vrot.slane %v4445_v9, %v6108_v31  ;;  %v2898_v18 = vrot.slane %v2891_v10, %v6108_v31  ;;  %v2906_v19 = vrot.slane %v4446_v11, %v6108_v31 }
 0x8f2   : > { %4637 = vmatmul.mubr.msk.bf16.vlgmr.msra.gmra.mrb[24].mxu0 %vm1077_vm1, %v2366_v25  ;;  %v2871_v32 = vcombine.low %v2847_v30, %v2863_v34  ;;  %v2872_v42 = vcombine.high %v2847_v30, %v2863_v34 }
 0x8f3   : > { %4649 = vmatpush3.bf16.msra.mxu0 %v4936_v24  ;;  %4652 = vmatprep.mubr.msk.bf16.mxu0 %vm5489_vm0, %v5488_v0  ;;  %v2907_v24 = vcombine.low %v2882_v16, %v2890_v17  ;;  %v2923_v25 = vcombine.low %v2898_v18, %v2906_v19  ;;  %v2908_v28 = vcombine.high %v2882_v16, %v2890_v17 }
 0x8f4   : > { %4650 = vmatprep.subr.bf16.mxu0 %v5488_v0  ;;  %v2924_v29 = vcombine.high %v2898_v18, %v2906_v19 }
 0x8f5   : > { %v2915_v35 = vrot.slane %v2907_v24, %v6110_v38  ;;  %v2931_v36 = vrot.slane %v2923_v25, %v6110_v38  ;;  %v2922_v40 = vrot.slane %v2908_v28, %v6110_v38 }
 0x8f6   : > { %v2938_v41 = vrot.slane %v2924_v29, %v6110_v38 }
 0x8f7   : > { %4651 = vmatpush3.bf16.msra.mxu0 %v4937_v20  ;;  %v2939_v33 = vcombine.low %v2915_v35, %v2931_v36  ;;  %v2940_v45 = vcombine.high %v2915_v35, %v2931_v36 }
 0x8f8   : > { %4662 = vmatprep.subr.bf16.mxu0 %v5488_v0  ;;  %v2941_v47 = vcombine.low %v2922_v40, %v2938_v41  ;;  %v2942_v49 = vcombine.high %v2922_v40, %v2938_v41 }
 0x8f9   : > { %v2944_v50 = vpack.c.bf16 %v2940_v45, %v2872_v42 }
 0x8fa   : > { %4653 = vmatmul.mubr.msk.bf16.vlgmr.msra.gmra.mrb[28].mxu0 %vm1077_vm1, %v6261_v63  ;;  %v2943_v63 = vpack.c.bf16 %v2939_v33, %v2871_v32  ;;  %v6340_v51 = vpack.c.bf16 %v2941_v47, %v2873_v46  ;;  %v6342_v52 = vpack.c.bf16 %v2942_v49, %v2874_v48 }
 0x8fb   : > { %4664 = vmatprep.mubr.msk.bf16.mxu0 %vm5489_vm0, %v5488_v0  ;;  %v3357_v54 = vsel %vm1697_vm2, %v2944_v50, 0 }
 0x8fc   : > { %v3311_v53 = vsel %vm1697_vm2, %v2943_v63, 0  ;;  %v3403_v48 = vsel %vm1697_vm2, %v6340_v51, 0  ;;  %v3449_v49 = vsel %vm1697_vm2, %v6342_v52, 0 }
 0x8fd   : > { %4657 = vmatpush3.bf16.xpose.msra.mxu1 %v3311_v53 }
 0x8fe   : > { %4668 = vmatprep.subr.bf16.mxu1 %v5488_v0 }
 0x900   : > { %4663 = vmatpush3.bf16.xpose.msra.mxu0 %v3357_v54 }
 0x901   : > { %4674 = vmatprep.subr.bf16.mxu0 %v5488_v0 }
 0x9c5   : > { %v2427_v56 = vpop.f32.mrb[24].mxu0 }
 0x9c6   : > { %v2428_v43 = vadd.f32 %v4433_v55, %v2427_v56  ;;  %v4638_v57 = vpop.f32.mrb[25].mxu0 }
 0x9c7   : > { %v2430_v44 = vpop.f32.mrb[26].mxu0 }
 0x9c8   : > { %2437 = vrot.lane.b32.xlu1 %v2428_v43, %s5492_s19  ;;  %2434 = vrot.lane.b32.xlu0 %v2428_v43, %s5491_s30  ;;  %v4639_v58 = vpop.f32.mrb[27].mxu0 }
 0x9cc   : > { %2440 = vrot.lane.b32.xlu0 %v2428_v43, %s5490_s26 }
 0x9cd   : > { %v3004_v60 = vpop.f32.mrb[28].mxu0 }
 0x9ce   : > { %v6351_v61 = vadd.f32 %v4447_v59, %v3004_v60  ;;  %v4654_v62 = vpop.f32.mrb[29].mxu0 }
 0x9cf   : > { %v3007_v4 = vpop.f32.mrb[30].mxu0 }
 0x9d0   : > { %v6353_v1 = vadd.f32 %v4447_v59, %v3007_v4  ;;  %v4655_v2 = vpop.f32.mrb[31].mxu0  ;;  %3013 = vrot.lane.b32.xlu0 %v6351_v61, %s5491_s30 }
 0x9d2   : > { %3015 = vrot.lane.b32.xlu1 %v6353_v1, %s5491_s30  ;;  %s1039_s30 = scalar_lea.vmem [#allocation25], %s4395_s1 }
 0xa3a   : > { %v2438_v3 = vpop.permute.xlu1 %2437  ;;  %v2435_v5 = vpop.permute.xlu0 %2434 }
 0xa3b   : > { %v2443_v6 = vcombine.low %v2428_v43, %v2438_v3  ;;  %v2444_v7 = vcombine.high %v2428_v43, %v2438_v3 }
 0xa3d   : > { %v2451_v11 = vrot.slane %v2443_v6, %v6108_v31  ;;  %v2458_v12 = vrot.slane %v2444_v7, %v6108_v31 }
 0xa3e   : > { %v2441_v8 = vpop.permute.xlu0 %2440 }
 0xa3f   : > { %v2459_v9 = vcombine.low %v2435_v5, %v2441_v8  ;;  %v2460_v10 = vcombine.high %v2435_v5, %v2441_v8 }
 0xa41   : > { %v2467_v13 = vrot.slane %v2459_v9, %v6108_v31  ;;  %v2474_v14 = vrot.slane %v2460_v10, %v6108_v31 }
 0xa43   : > { %v2475_v15 = vcombine.low %v2451_v11, %v2467_v13  ;;  %v2476_v16 = vcombine.high %v2451_v11, %v2467_v13  ;;  %v2491_v17 = vcombine.low %v2458_v12, %v2474_v14  ;;  %v2492_v18 = vcombine.high %v2458_v12, %v2474_v14  ;;  %v3014_v11 = vpop.permute.xlu0 %3013 }
 0xa44   : > { %v3016_v12 = vpop.permute.xlu1 %3015 }
 0xa45   : > { %v2483_v19 = vrot.slane %v2475_v15, %v6110_v38  ;;  %v2490_v20 = vrot.slane %v2476_v16, %v6110_v38  ;;  %v2499_v21 = vrot.slane %v2491_v17, %v6110_v38  ;;  %v2506_v22 = vrot.slane %v2492_v18, %v6110_v38 }
 0xa47   : > { %v2511_v24 = vcombine.low %v2483_v19, %v2490_v20  ;;  %v4437_v25 = vcombine.high %v2483_v19, %v2490_v20  ;;  %v2527_v26 = vcombine.low %v2499_v21, %v2506_v22  ;;  %v4438_v27 = vcombine.high %v2499_v21, %v2506_v22 }
 0xa49   : > { %v2518_v28 = vrot.slane %v2511_v24, %v6108_v31  ;;  %v2526_v29 = vrot.slane %v4437_v25, %v6108_v31  ;;  %v2534_v30 = vrot.slane %v2527_v26, %v6108_v31  ;;  %v2542_v34 = vrot.slane %v4438_v27, %v6108_v31 }
 0xa4b   : > { %v2543_v35 = vcombine.low %v2518_v28, %v2526_v29  ;;  %v2559_v36 = vcombine.low %v2534_v30, %v2542_v34  ;;  %v2544_v37 = vcombine.high %v2518_v28, %v2526_v29  ;;  %v2560_v39 = vcombine.high %v2534_v30, %v2542_v34 }
 0xa4d   : > { %v2551_v40 = vrot.slane %v2543_v35, %v6110_v38  ;;  %v2567_v41 = vrot.slane %v2559_v36, %v6110_v38  ;;  %v2558_v46 = vrot.slane %v2544_v37, %v6110_v38  ;;  %v2574_v47 = vrot.slane %v2560_v39, %v6110_v38 }
 0xa4f   : > { %v2575_v32 = vcombine.low %v2551_v40, %v2567_v41  ;;  %v2576_v33 = vcombine.high %v2551_v40, %v2567_v41  ;;  %v2577_v63 = vcombine.low %v2558_v46, %v2574_v47  ;;  %v2578_v50 = vcombine.high %v2558_v46, %v2574_v47 }
 0xa51   : > { %v2579_v42 = vpack.c.bf16 %v2575_v32, %v2575_v32  ;;  %v2580_v45 = vpack.c.bf16 %v2576_v33, %v2576_v33  ;;  %v2581_v53 = vpack.c.bf16 %v2577_v63, %v2577_v63  ;;  %v2582_v54 = vpack.c.bf16 %v2578_v50, %v2578_v50 }
 0xa53   : > { %4659 = vmatmul.mubr.msk.bf16.vlgmr.msra.gmra.mrb[28].mxu1 %vm1697_vm2, %v2579_v42  ;;  %4665 = vmatmul.mubr.msk.bf16.vlgmr.msra.gmra.mrb[32].mxu0 %vm1697_vm2, %v2580_v45 }
 0xa54   : > { %4669 = vmatpush3.bf16.xpose.msra.mxu1 %v3403_v48  ;;  %4675 = vmatpush3.bf16.xpose.msra.mxu0 %v3449_v49 }
 0xa55   : > { %4670 = vmatprep.mubr.msk.bf16.mxu1 %vm5489_vm0, %v5488_v0  ;;  %4676 = vmatprep.mubr.msk.bf16.mxu0 %vm5489_vm0, %v5488_v0 }
 0xa56   : > { %4680 = vmatprep.subr.bf16.mxu1 %v5488_v0  ;;  %4686 = vmatprep.subr.bf16.mxu0 %v5488_v0 }
 0xa5b   : > { %4671 = vmatmul.mubr.msk.bf16.vlgmr.msra.gmra.mrb[32].mxu1 %vm1697_vm2, %v2581_v53  ;;  %4677 = vmatmul.mubr.msk.bf16.vlgmr.msra.gmra.mrb[36].mxu0 %vm1697_vm2, %v2582_v54 }
 0xa5c   : > { %4682 = vmatprep.mubr.msk.bf16.mxu1 %vm5489_vm0, %v5488_v0  ;;  %4688 = vmatprep.mubr.msk.bf16.mxu0 %vm5489_vm0, %v5488_v0 }
 0xb26   : > { %v3347_v51 = vpop.f32.mrb[28].mxu1  ;;  %v3393_v52 = vpop.f32.mrb[32].mxu0 }
 0xb27   : > { %v4660_v55 = vpop.f32.mrb[29].mxu1  ;;  %v4666_v56 = vpop.f32.mrb[33].mxu0  ;;  %v3491_v43 = vsel %vm2264_vm4, %v3347_v51, -inf  ;;  %v3494_v57 = vsel %vm2264_vm4, %v3393_v52, -inf }
 0xb28   : > { %v3350_v44 = vpop.f32.mrb[30].mxu1  ;;  %3492 = vmax.xlane.f32.xlu1 %v3491_v43  ;;  %3495 = vmax.xlane.f32.xlu0 %v3494_v57  ;;  %v3396_v58 = vpop.f32.mrb[34].mxu0 }
 0xb29   : > { %v4661_v59 = vpop.f32.mrb[31].mxu1  ;;  %v4667_v60 = vpop.f32.mrb[35].mxu0 }
 0xb2e   : > { %v3439_v62 = vpop.f32.mrb[32].mxu1  ;;  %v3485_v4 = vpop.f32.mrb[36].mxu0 }
 0xb2f   : > { %v4672_v2 = vpop.f32.mrb[33].mxu1  ;;  %v4678_v3 = vpop.f32.mrb[37].mxu0  ;;  %v3497_v5 = vsel %vm2264_vm4, %v3439_v62, -inf  ;;  %v3500_v6 = vsel %vm2264_vm4, %v3485_v4, -inf }
 0xb30   : > { %v3442_v7 = vpop.f32.mrb[34].mxu1  ;;  %3498 = vmax.xlane.f32.xlu0 %v3497_v5  ;;  %3501 = vmax.xlane.f32.xlu1 %v3500_v6  ;;  %v3488_v8 = vpop.f32.mrb[38].mxu0 }
 0xb31   : > { %v4673_v9 = vpop.f32.mrb[35].mxu1  ;;  %v4679_v10 = vpop.f32.mrb[39].mxu0 }
 0xb41   : > { %3019 = vrot.lane.b32.xlu1 %v6351_v61, %s5492_s19 }
 0xb46   : > { %3021 = vrot.lane.b32.xlu0 %v6353_v1, %s5492_s19  ;;  %s6727_s19 = sld [smem:[#allocation57_spill]] }
 0xbb5   : > { %v3493_v13 = vpop.xlane.xlu1 %3492  ;;  %v3496_v14 = vpop.xlane.xlu0 %3495 }
 0xbb6   : > { %v3503_v15 = vsub.f32 %v3347_v51, %v3493_v13  ;;  %v3504_v16 = vsub.f32 %v3393_v52, %v3496_v14 }
 0xbb8   : > { %v3507_v17 = vmul.f32 1.442695, %v3503_v15  ;;  %v3509_v18 = vmul.f32 1.442695, %v3504_v16 }
 0xbba   : > { %4964 = vpow2.f32 %v3507_v17 }
 0xbbb   : > { %4966 = vpow2.f32 %v3509_v18 }
 0xbbd   : > { %v3502_v24 = vpop.xlane.xlu1 %3501  ;;  %v3499_v25 = vpop.xlane.xlu0 %3498 }
 0xbbe   : > { %v3506_v26 = vsub.f32 %v3485_v4, %v3502_v24  ;;  %v3505_v27 = vsub.f32 %v3439_v62, %v3499_v25 }
 0xbc0   : > { %v3513_v28 = vmul.f32 1.442695, %v3506_v26  ;;  %v3511_v29 = vmul.f32 1.442695, %v3505_v27 }
 0xbc1   : > { %v3022_v37 = vpop.permute.xlu0 %3021  ;;  %v3020_v39 = vpop.permute.xlu1 %3019 }
 0xbc2   : > { %4968 = vpow2.f32 %v3513_v28  ;;  %v3099_v32 = vcombine.low %v6353_v1, %v3022_v37  ;;  %v3100_v33 = vcombine.high %v6353_v1, %v3022_v37  ;;  %v3031_v42 = vcombine.low %v6351_v61, %v3020_v39 }
 0xbc3   : > { %4970 = vpow2.f32 %v3511_v29  ;;  %v3032_v45 = vcombine.high %v6351_v61, %v3020_v39 }
 0xbc4   : > { %v6401_v19 = vpop.eup %4964  ;;  %v3107_v53 = vrot.slane %v3099_v32, %v6108_v31  ;;  %v3114_v54 = vrot.slane %v3100_v33, %v6108_v31 }
 0xbc5   : > { %v6403_v20 = vpop.eup %4966  ;;  %v3515_v21 = vsel %vm2264_vm4, %v6401_v19, 0.0  ;;  %v3046_v55 = vrot.slane %v3032_v45, %v6108_v31 }
 0xbc6   : > { %3516 = vadd.xlane.f32.xlu0 %v3515_v21  ;;  %v3518_v22 = vsel %vm2264_vm4, %v6403_v20, 0.0 }
 0xbc7   : > { %3519 = vadd.xlane.f32.xlu1 %v3518_v22 }
 0xbcc   : > { %v6413_v30 = vpop.eup %4968 }
 0xbcd   : > { %v6415_v34 = vpop.eup %4970  ;;  %v3524_v35 = vsel %vm2264_vm4, %v6413_v30, 0.0 }
 0xbce   : > { %v3521_v36 = vsel %vm2264_vm4, %v6415_v34, 0.0 }
 0xbd8   : > { %3025 = vrot.lane.b32.xlu1 %v6351_v61, %s5490_s26 }
 0xbdc   : > { %3027 = vrot.lane.b32.xlu0 %v6353_v1, %s5490_s26  ;;  %v3039_v1 = vrot.slane %v3031_v42, %v6108_v31  ;;  %s4484_s26 = sshll.u32 %s5665_s3, 7  ;;  %s5498_s3 = smov [#allocation25]  }
 0xbdd   : > { %s5380_s1 = sshll.u32 %s5498_s3, 4  ;;  %s5381_s1 = int_to_ptr.vmem [resolvable:$false] %s5380_s1 }
 0xbfb   : > { %3525 = vadd.xlane.f32.xlu0 %v3524_v35 }
 0xbfc   : > { %3522 = vadd.xlane.f32.xlu1 %v3521_v36 }
 0xc53   : > { %v3517_v40 = vpop.xlane.xlu0 %3516 }
 0xc54   : > { %v3520_v41 = vpop.xlane.xlu1 %3519  ;;  %4972 = vrcp.f32 %v3517_v40 }
 0xc55   : > { %4974 = vrcp.f32 %v3520_v41 }
 0xc57   : > { %v3028_v46 = vpop.permute.xlu0 %3027 }
 0xc58   : > { %v3115_v47 = vcombine.low %v3016_v12, %v3028_v46  ;;  %v3116_v48 = vcombine.high %v3016_v12, %v3028_v46  ;;  %v3026_v49 = vpop.permute.xlu1 %3025 }
 0xc59   : > { %v3047_v63 = vcombine.low %v3014_v11, %v3026_v49  ;;  %v3048_v50 = vcombine.high %v3014_v11, %v3026_v49 }
 0xc5a   : > { %v3123_v51 = vrot.slane %v3115_v47, %v6108_v31  ;;  %v3130_v52 = vrot.slane %v3116_v48, %v6108_v31 }
 0xc5b   : > { %v3055_v61 = vrot.slane %v3047_v63, %v6108_v31  ;;  %v3062_v56 = vrot.slane %v3048_v50, %v6108_v31 }
 0xc5c   : > { %v3131_v43 = vcombine.low %v3107_v53, %v3123_v51  ;;  %v3132_v57 = vcombine.high %v3107_v53, %v3123_v51  ;;  %v3147_v44 = vcombine.low %v3114_v54, %v3130_v52  ;;  %v3148_v58 = vcombine.high %v3114_v54, %v3130_v52 }
 0xc5d   : > { %v3063_v59 = vcombine.low %v3039_v1, %v3055_v61  ;;  %v3064_v60 = vcombine.high %v3039_v1, %v3055_v61  ;;  %v3079_v62 = vcombine.low %v3046_v55, %v3062_v56  ;;  %v3080_v4 = vcombine.high %v3046_v55, %v3062_v56 }
 0xc5e   : > { %v3139_v2 = vrot.slane %v3131_v43, %v6110_v38  ;;  %v3146_v3 = vrot.slane %v3132_v57, %v6110_v38  ;;  %v3155_v5 = vrot.slane %v3147_v44, %v6110_v38  ;;  %v3162_v6 = vrot.slane %v3148_v58, %v6110_v38  ;;  %v4973_v47 = vpop.eup %4972 }
 0xc5f   : > { %v3071_v7 = vrot.slane %v3063_v59, %v6110_v38  ;;  %v3078_v8 = vrot.slane %v3064_v60, %v6110_v38  ;;  %v3087_v9 = vrot.slane %v3079_v62, %v6110_v38  ;;  %v3094_v14 = vrot.slane %v3080_v4, %v6110_v38  ;;  %v4975_v50 = vpop.eup %4974 }
 0xc60   : > { %v3235_v10 = vcombine.low %v3139_v2, %v3146_v3  ;;  %v4453_v11 = vcombine.high %v3139_v2, %v3146_v3  ;;  %v3251_v12 = vcombine.low %v3155_v5, %v3162_v6  ;;  %v4454_v13 = vcombine.high %v3155_v5, %v3162_v6 }
 0xc61   : > { %v3167_v15 = vcombine.low %v3071_v7, %v3078_v8  ;;  %v4451_v16 = vcombine.high %v3071_v7, %v3078_v8  ;;  %v3183_v26 = vcombine.low %v3087_v9, %v3094_v14  ;;  %v4452_v27 = vcombine.high %v3087_v9, %v3094_v14 }
 0xc62   : > { %v3242_v17 = vrot.slane %v3235_v10, %v6108_v31  ;;  %v3250_v18 = vrot.slane %v4453_v11, %v6108_v31  ;;  %v3258_v21 = vrot.slane %v3251_v12, %v6108_v31  ;;  %v3266_v22 = vrot.slane %v4454_v13, %v6108_v31 }
 0xc63   : > { %v3174_v24 = vrot.slane %v3167_v15, %v6108_v31  ;;  %v3182_v25 = vrot.slane %v4451_v16, %v6108_v31  ;;  %v3190_v35 = vrot.slane %v3183_v26, %v6108_v31  ;;  %v3198_v40 = vrot.slane %v4452_v27, %v6108_v31 }
 0xc64   : > { %v3267_v28 = vcombine.low %v3242_v17, %v3250_v18  ;;  %v3268_v29 = vcombine.high %v3242_v17, %v3250_v18  ;;  %v3283_v37 = vcombine.low %v3258_v21, %v3266_v22  ;;  %v3284_v32 = vcombine.high %v3258_v21, %v3266_v22 }
 0xc65   : > { %v3199_v36 = vcombine.low %v3174_v24, %v3182_v25  ;;  %v3200_v39 = vcombine.high %v3174_v24, %v3182_v25  ;;  %v3215_v45 = vcombine.low %v3190_v35, %v3198_v40  ;;  %v3216_v46 = vcombine.high %v3190_v35, %v3198_v40 }
 0xc66   : > { %v3275_v41 = vrot.slane %v3267_v28, %v6110_v38  ;;  %v3291_v33 = vrot.slane %v3283_v37, %v6110_v38  ;;  %v3282_v49 = vrot.slane %v3268_v29, %v6110_v38  ;;  %v3298_v63 = vrot.slane %v3284_v32, %v6110_v38 }
 0xc67   : > { %v3207_v42 = vrot.slane %v3199_v36, %v6110_v38  ;;  %v3214_v48 = vrot.slane %v3200_v39, %v6110_v38  ;;  %v3223_v53 = vrot.slane %v3215_v45, %v6110_v38  ;;  %v3230_v52 = vrot.slane %v3216_v46, %v6110_v38  ;;  %v4938_v46 = vld [vmem:[#allocation22] sm:$0xff]  }
 0xc68   : > { %v3299_v54 = vcombine.low %v3275_v41, %v3291_v33  ;;  %v3300_v51 = vcombine.high %v3275_v41, %v3291_v33  ;;  %v3531_v61 = vmul.f32 %v4973_v47, %v6401_v19  ;;  %v3532_v56 = vmul.f32 %v4975_v50, %v6403_v20 }
 0xc69   : > { %v3231_v1 = vcombine.low %v3207_v42, %v3223_v53  ;;  %v3232_v55 = vcombine.high %v3207_v42, %v3223_v53  ;;  %v3301_v43 = vcombine.low %v3282_v49, %v3298_v63  ;;  %v3302_v57 = vcombine.high %v3282_v49, %v3298_v63 }
 0xc6a   : > { %v3233_v59 = vcombine.low %v3214_v48, %v3230_v52  ;;  %v3234_v60 = vcombine.high %v3214_v48, %v3230_v52  ;;  %v3535_v62 = vpack.c.bf16 %v3531_v61, %v3531_v61  ;;  %v3536_v4 = vpack.c.bf16 %v3532_v56, %v3532_v56  ;;  %v4939_v56 = vld [vmem:[#allocation22 + $0x8] sm:$0xff]  }
 0xc6b   : > { %v3303_v44 = vpack.c.bf16 %v3299_v54, %v3231_v1  ;;  %v3304_v58 = vpack.c.bf16 %v3300_v51, %v3232_v55 }
 0xc6c   : > { %v3305_v2 = vpack.c.bf16 %v3301_v43, %v3233_v59  ;;  %v3306_v3 = vpack.c.bf16 %v3302_v57, %v3234_v60 }
 0xc6d   : > { %4681 = vmatpush3.bf16.msra.mxu1 %v3303_v44  ;;  %4687 = vmatpush3.bf16.msra.mxu0 %v3304_v58 }
 0xc6e   : > { %4692 = vmatprep.subr.bf16.mxu1 %v5488_v0  ;;  %4698 = vmatprep.subr.bf16.mxu0 %v5488_v0 }
 0xc70   : > { %4683 = vmatmul.mubr.msk.bf16.vlgmr.msra.gmra.mrb[36].mxu1 %vm2264_vm4, %v3535_v62  ;;  %4689 = vmatmul.mubr.msk.bf16.vlgmr.msra.gmra.mrb[40].mxu0 %vm2264_vm4, %v3536_v4 }
 0xc71   : > { %4693 = vmatpush3.bf16.msra.mxu1 %v3305_v2  ;;  %4699 = vmatpush3.bf16.msra.mxu0 %v3306_v3 }
 0xc72   : > { %4694 = vmatprep.mubr.msk.bf16.mxu1 %vm5489_vm0, %v5488_v0  ;;  %4700 = vmatprep.mubr.msk.bf16.mxu0 %vm5489_vm0, %v5488_v0 }
 0xc73   : > { %4704 = vmatprep.subr.bf16.mxu1 %v5488_v0  ;;  %4712 = vmatprep.subr.bf16.mxu0 %v5488_v0 }
 0xc88   : > { %v3526_v19 = vpop.xlane.xlu0 %3525 }
 0xc89   : > { %4976 = vrcp.f32 %v3526_v19  ;;  %v3523_v20 = vpop.xlane.xlu1 %3522 }
 0xc8a   : > { %4978 = vrcp.f32 %v3523_v20 }
 0xc93   : > { %v4977_v5 = vpop.eup %4976 }
 0xc94   : > { %v4979_v6 = vpop.eup %4978  ;;  %v3534_v7 = vmul.f32 %v4977_v5, %v6413_v30 }
 0xc95   : > { %v3533_v8 = vmul.f32 %v4979_v6, %v6415_v34 }
 0xc96   : > { %v3538_v9 = vpack.c.bf16 %v3534_v7, %v3534_v7 }
 0xc97   : > { %v3537_v10 = vpack.c.bf16 %v3533_v8, %v3533_v8 }
 0xc98   : > { %4701 = vmatmul.mubr.msk.bf16.vlgmr.msra.gmra.mrb[44].mxu0 %vm2264_vm4, %v3538_v9 }
 0xc99   : > { %4695 = vmatmul.mubr.msk.bf16.vlgmr.msra.gmra.mrb[40].mxu1 %vm2264_vm4, %v3537_v10  ;;  %4716 = vmatprep.mubr.msk.bf16.mxu0 %vm5489_vm0, %v5488_v0  ;;  %v4465_v10 = vld [vmem:[#allocation23] ss:$0 sm:$0xff] }
 0xc9a   : > { %4708 = vmatprep.mubr.msk.bf16.mxu1 %vm5489_vm0, %v5488_v0  ;;  %4705 = vmatpush3.bf16.msra.mxu1 %v4938_v46 }
 0xc9b   : > { %4706 = vmatprep.subr.bf16.mxu1 %v5488_v0 }
 0xc9e   : > { %4707 = vmatpush3.bf16.msra.mxu1 %v4939_v56 }
 0xc9f   : > { %4720 = vmatprep.subr.bf16.mxu1 %v5488_v0 }
 0xd43   : > { %v3576_v11 = vpop.f32.mrb[36].mxu1  ;;  %v3619_v12 = vpop.f32.mrb[40].mxu0 }
 0xd44   : > { %v4684_v13 = vpop.f32.mrb[37].mxu1  ;;  %v4690_v14 = vpop.f32.mrb[41].mxu0 }
 0xd45   : > { %v3579_v15 = vpop.f32.mrb[38].mxu1  ;;  %v3622_v30 = vpop.f32.mrb[42].mxu0 }
 0xd46   : > { %v4685_v16 = vpop.f32.mrb[39].mxu1  ;;  %v4691_v34 = vpop.f32.mrb[43].mxu0 }
 0xd6b   : > { %v3705_v17 = vpop.f32.mrb[44].mxu0 }
 0xd6c   : > { %v3662_v18 = vpop.f32.mrb[40].mxu1  ;;  %v3727_v21 = vcombine.low %v3619_v12, %v3705_v17  ;;  %v3728_v22 = vcombine.high %v3619_v12, %v3705_v17  ;;  %v4702_v24 = vpop.f32.mrb[45].mxu0 }
 0xd6d   : > { %v3711_v25 = vcombine.low %v3576_v11, %v3662_v18  ;;  %v3712_v26 = vcombine.high %v3576_v11, %v3662_v18  ;;  %v4696_v27 = vpop.f32.mrb[41].mxu1  ;;  %v3708_v28 = vpop.f32.mrb[46].mxu0  ;;  %v4940_v24 = vld [vmem:[%s6616_s18] sm:$0xff]  }
 0xd6e   : > { %v3735_v29 = vrot.slane %v3727_v21, %v6108_v31  ;;  %v3742_v35 = vrot.slane %v3728_v22, %v6108_v31  ;;  %v3665_v36 = vpop.f32.mrb[42].mxu1  ;;  %v4703_v37 = vpop.f32.mrb[47].mxu0  ;;  %4713 = vmatpush3.bf16.msra.mxu0 %v4940_v24 }
 0xd6f   : > { %v3719_v39 = vrot.slane %v3711_v25, %v6108_v31  ;;  %v3726_v40 = vrot.slane %v3712_v26, %v6108_v31  ;;  %v4697_v41 = vpop.f32.mrb[43].mxu1  ;;  %v4941_v25 = vld [vmem:[%s6616_s18 + $0x8] sm:$0xff]   ;;  %4714 = vmatprep.subr.bf16.mxu0 %v5488_v0  ;;  %v4469_v36 = vld [vmem:[%s6622_s24] ss:$0 sm:$0xff] }
 0xd70   : > { %v4943_v26 = vld [vmem:[%s6618_s20 + $0x8] sm:$0xff]  }
 0xd71   : > { %v3743_v32 = vcombine.low %v3719_v39, %v3735_v29  ;;  %v3744_v33 = vcombine.high %v3719_v39, %v3735_v29  ;;  %v3759_v42 = vcombine.low %v3726_v40, %v3742_v35  ;;  %v3760_v45 = vcombine.high %v3726_v40, %v3742_v35  ;;  %v4470_v39 = vld [vmem:[%s6623_s25] ss:$0 sm:$0xff] }
 0xd72   : > { %4715 = vmatpush3.bf16.msra.mxu0 %v4941_v25 }
 0xd73   : > { %v3751_v47 = vrot.slane %v3743_v32, %v6110_v38  ;;  %v3758_v48 = vrot.slane %v3744_v33, %v6110_v38  ;;  %v3767_v49 = vrot.slane %v3759_v42, %v6110_v38  ;;  %v3774_v63 = vrot.slane %v3760_v45, %v6110_v38  ;;  %v4944_v33 = vld [vmem:[%s6618_s20 + $0x10] sm:$0xff]   ;;  %v4945_v42 = vld [vmem:[%s6618_s20 + $0x18] sm:$0xff]   ;;  %v4471_v45 = vld [vmem:[%s6727_s19] ss:$0 sm:$0xff]  ;;  %s4156_s19 = sshll.u32 %s1039_s30, 4  ;;  %s6557_s19 = int_to_ptr.vmem [resolvable:$true] %s4156_s19 }
 0xd74   : > { %s5376_s29 = scalar_lea.vmem %s6557_s19, 128  ;;  %p5383_p2 = scmp.lt.s32.totalorder %s6557_s19, %s5381_s1 }
 0xd75   : > { %v3779_v50 = vcombine.low %v3751_v47, %v3758_v48  ;;  %v4463_v53 = vcombine.high %v3751_v47, %v3758_v48  ;;  %v3795_v54 = vcombine.low %v3767_v49, %v3774_v63  ;;  %v4464_v51 = vcombine.high %v3767_v49, %v3774_v63  ;;  %p5377_p5 = scmp.ne.s32.totalorder %s6557_s19, %s5376_s29 }
 0xd77   : > { %v3786_v52 = vrot.slane %v3779_v50, %v6108_v31  ;;  %v3794_v1 = vrot.slane %v4463_v53, %v6108_v31  ;;  %v3802_v55 = vrot.slane %v3795_v54, %v6108_v31  ;;  %v3810_v61 = vrot.slane %v4464_v51, %v6108_v31  ;;  %p5378_p12 = pnand %p5377_p5, %p6734_p9 }
 0xd79   : > { %v3812_v43 = vcombine.high %v3786_v52, %v3794_v1  ;;  %v3828_v57 = vcombine.high %v3802_v55, %v3810_v61  ;;  %v3811_v44 = vcombine.low %v3786_v52, %v3794_v1  ;;  %v3827_v58 = vcombine.low %v3802_v55, %v3810_v61  ;;  %p5379_p10 = pneg %p5378_p12 }
 0xd7b   : > { %v3826_v59 = vrot.slane %v3812_v43, %v6110_v38  ;;  %v3842_v60 = vrot.slane %v3828_v57, %v6110_v38  ;;  %v3819_v62 = vrot.slane %v3811_v44, %v6110_v38  ;;  %v3835_v4 = vrot.slane %v3827_v58, %v6110_v38 }
 0xd7d   : > { %v3845_v2 = vcombine.low %v3826_v59, %v3842_v60  ;;  %v3844_v3 = vcombine.high %v3819_v62, %v3835_v4  ;;  %v3846_v19 = vcombine.high %v3826_v59, %v3842_v60  ;;  %v3843_v31 = vcombine.low %v3819_v62, %v3835_v4 }
 0xd7f   : > { %3852 = vrot.lane.b32.xlu1 %v3845_v2, %s5495_s0  ;;  %3848 = vrot.lane.b32.xlu0 %v3844_v3, %s5496_s21  ;;  %v4481_v3 = vld [vmem:[%s6731_s9] ss:$0 sm:$0xff]  ;;  %s5382_s9 = scalar_lea.vmem %s5381_s1, 256 }
 0xd80   : > { %p5384_p3 = scmp.lt.s32.totalorder %s5382_s9, %s5376_s29 }
 0xd82   : > { %p5385_p4 = por %p5384_p3, %p5383_p2 }
 0xd83   : > { %3856 = vrot.lane.b32.xlu1 %v3846_v19, %s5497_s7  ;;  %s6728_s7 = sld [smem:[#allocation58_spill]] }
 0xd84   : > { %p5386_p7 = pnand %p5385_p4, %p5379_p10 }
 0xdf1   : > { %v3853_v20 = vpop.permute.xlu1 %3852  ;;  %v3849_v5 = vpop.permute.xlu0 %3848 }
 0xdf2   : > { %v3859_v6 = vsel %vm1697_vm2, %v3843_v31, %v3849_v5  ;;  %v4482_v31 = vld [vmem:[%s6732_s11] ss:$0 sm:$0xff] }
 0xdf3   : > { %v3860_v8 = vsel %vm2264_vm4, %v3859_v6, %v3853_v20 }
 0xdf5   : > { %v3857_v7 = vpop.permute.xlu1 %3856 }
 0xdf6   : > { %v3861_v9 = vsel %vm2266_vm5, %v3860_v8, %v3857_v7 }
 0xdf7   : > { %v3862_v38 = vpack.c.bf16 %v3861_v9, %v3861_v9 }
 0xdf9   : > { %4709 = vmatmul.mubr.msk.bf16.vlgmr.msra.gmra.mrb[44].mxu1 %vm1077_vm1, %v3862_v38 }
 0xdfa   : > { %4728 = vmatprep.mubr.msk.bf16.mxu1 %vm5489_vm0, %v5488_v0 }
 0xecc   : > { %v3923_v11 = vpop.f32.mrb[44].mxu1 }
 0xecd   : > { %v3924_v12 = vadd.f32 %v4465_v10, %v3923_v11  ;;  %v4710_v13 = vpop.f32.mrb[45].mxu1 }
 0xece   : > { %v3926_v14 = vpop.f32.mrb[46].mxu1 }
 0xecf   : > { %v4711_v15 = vpop.f32.mrb[47].mxu1  ;;  %v3929_v30 = vadd.f32 %v3924_v12, %v6289_v23  ;;  %v4942_v23 = vld [vmem:[%s6618_s20] sm:$0xff]  }
 0xed0   : > { %4721 = vmatpush3.bf16.msra.mxu1 %v4942_v23 }
 0xed1   : > { %v3930_v16 = vsel %vm1077_vm1, %v3929_v30, 0.0  ;;  %4722 = vmatprep.subr.bf16.mxu1 %v5488_v0 }
 0xed2   : > { %3931 = vadd.xlane.f32.xlu0 %v3930_v16 }
 0xed4   : > { %4723 = vmatpush3.bf16.msra.mxu1 %v4943_v26 }
 0xed5   : > { %4724 = vmatprep.subr.bf16.mxu1 %v5488_v0 }
 0xed8   : > { %4725 = vmatpush3.bf16.msra.mxu1 %v4944_v33 }
 0xed9   : > { %4726 = vmatprep.subr.bf16.mxu1 %v5488_v0  ;;  %v4475_v0 = vld [vmem:[%s6728_s7] ss:$0 sm:$0xff]  ;;  %s6733_s7 = sld [smem:[#allocation61_spill]] }
 0xedc   : > { %4727 = vmatpush3.bf16.msra.mxu1 %v4945_v42 }
 0xedf   : > { %s6555_s2 = scalar_lea.hbm %s6733_s7, %s4484_s26 }
 0xf5f   : > { %v3932_v34 = vpop.xlane.xlu0 %3931 }
 0xf60   : > { %v3933_v17 = vmul.f32 0.03125, %v3932_v34 }
 0xf62   : > { %v3934_v18 = vsub.f32 %v3929_v30, %v3933_v17 }
 0xf64   : > { %v3935_v21 = vmul.f32 %v3934_v18, %v3934_v18 }
 0xf66   : > { %v3936_v22 = vsel %vm1077_vm1, %v3935_v21, 0.0 }
 0xf67   : > { %3937 = vadd.xlane.f32.xlu1 %v3936_v22 }
 0xff4   : > { %v3938_v27 = vpop.xlane.xlu1 %3937 }
 0xff5   : > { %v3939_v28 = vmul.f32 0.03125, %v3938_v27 }
 0xff7   : > { %v3940_v29 = vadd.f32 1e-05, %v3939_v28 }
 0xff9   : > { %4980 = vrsqrt.f32 %v3940_v29 }
0x1003   : > { %v4981_v35 = vpop.eup %4980 }
0x1004   : > { %v3942_v37 = vmul.f32 %v4981_v35, %v3934_v18 }
0x1006   : > { %v3950_v40 = vmul.f32 %v4469_v36, %v3942_v37 }
0x1008   : > { %v3958_v41 = vadd.f32 %v4470_v39, %v3950_v40 }
0x100a   : > { %v3959_v32 = vpack.c.bf16 %v3958_v41, %v3958_v41 }
0x100c   : > { %4717 = vmatmul.mubr.msk.bf16.vlgmr.msra.gmra.mrb[48].mxu0 %vm1077_vm1, %v3959_v32 }
0x10df   : > { %v4020_v46 = vpop.f32.mrb[48].mxu0 }
0x10e0   : > { %v4021_v47 = vadd.f32 %v4471_v45, %v4020_v46  ;;  %v4718_v48 = vpop.f32.mrb[49].mxu0 }
0x10e1   : > { %v4023_v49 = vpop.f32.mrb[50].mxu0 }
0x10e2   : > { %v4026_v63 = vmax.f32 %v4021_v47, 0.0  ;;  %v4719_v50 = vpop.f32.mrb[51].mxu0 }
0x10e4   : > { %v4027_v53 = vpack.c.bf16 %v4026_v63, %v4026_v63 }
0x10e6   : > { %4729 = vmatmul.mubr.msk.bf16.vlgmr.msra.gmra.mrb[48].mxu1 %vm4067_vm6, %v4027_v53 }
0x11b9   : > { %v4105_v54 = vpop.f32.mrb[48].mxu1 }
0x11ba   : > { %v4106_v51 = vadd.f32 %v4475_v0, %v4105_v54  ;;  %v4730_v52 = vpop.f32.mrb[49].mxu1 }
0x11bb   : > { %v4108_v1 = vpop.f32.mrb[50].mxu1 }
0x11bc   : > { %v4731_v55 = vpop.f32.mrb[51].mxu1  ;;  %v4111_v61 = vadd.f32 %v4106_v51, %v3958_v41 }
0x11be   : > { %v4112_v56 = vsel %vm1077_vm1, %v4111_v61, 0.0 }
0x11bf   : > { %4113 = vadd.xlane.f32.xlu0 %v4112_v56 }
0x124c   : > { %v4114_v43 = vpop.xlane.xlu0 %4113 }
0x124d   : > { %v4115_v57 = vmul.f32 0.03125, %v4114_v43 }
0x124f   : > { %v4116_v44 = vsub.f32 %v4111_v61, %v4115_v57 }
0x1251   : > { %v4117_v58 = vmul.f32 %v4116_v44, %v4116_v44 }
0x1253   : > { %v4118_v59 = vsel %vm1077_vm1, %v4117_v58, 0.0 }
0x1254   : > { %4119 = vadd.xlane.f32.xlu0 %v4118_v59 }
0x12e1   : > { %v4120_v60 = vpop.xlane.xlu0 %4119 }
0x12e2   : > { %v4121_v62 = vmul.f32 0.03125, %v4120_v60 }
0x12e4   : > { %v4122_v4 = vadd.f32 1e-05, %v4121_v62 }
0x12e6   : > { %4982 = vrsqrt.f32 %v4122_v4 }
0x12f0   : > { %v4983_v2 = vpop.eup %4982 }
0x12f1   : > { %v4124_v19 = vmul.f32 %v4983_v2, %v4116_v44 }
0x12f3   : > { %v4132_v20 = vmul.f32 %v4481_v3, %v4124_v19 }
0x12f5   : > { %v4140_v5 = vadd.f32 %v4482_v31, %v4132_v20 }
0x12f7   : > { %4141 = vst.msk [vmem:[%s1039_s30] sm:$0xff] %vm1077_vm1, %v4140_v5 }
0x12f8   : > { %5389 = shalt.err (!%p5386_p7)
}
0x12f9   : > { %s5390_s5 = scalar_lea.hbm %s6555_s2, 128  ;;  %s5394_s11 = scalar_lea.hbm %s6733_s7, 256 }
0x12fa   : > { %p5391_p8 = scmp.ne.s32.totalorder %s6555_s2, %s5390_s5  ;;  %p5395_p0 = scmp.lt.u32.totalorder %s6555_s2, %s6733_s7 }
0x12fb   : > { %p5396_p1 = scmp.lt.u32.totalorder %s5394_s11, %s5390_s5  ;;  %p5398_p5 = scmp.lt.u32.totalorder %s5390_s5, %s6555_s2 }
0x12fc   : > { %p5392_p11 = pnand %p5391_p8, %p6734_p9 }
0x12fd   : > { %p5397_p6 = por %p5396_p1, %p5395_p0 }
0x12fe   : > { %p5393_p13 = pneg %p5392_p11 }
0x12ff   : > { %p5399_p12 = por %p5398_p5, %p5397_p6 }
0x1301   : > { %p5400_p10 = pnand %p5399_p12, %p5393_p13 }
0x1303   : > { %5403 = shalt.err (!%p5400_p10)
}
0x1304   : > { %4788 = dma.vmem_to_hbm [thread:$0]  (%p6734_p9), %s6557_s19, 128, %s6555_s2, %s4143_s27  }
0x1305 PF: > { %s6735_s0 = sld [smem:[#allocation38_spill]]  ;;  %s6736_s21 = sld [smem:[#allocation35_spill]] }
0x1306   : > { %s6737_s29 = sld [smem:[#allocation42_spill]] }
0x130b   : > { %p4865_p2 = scmp.ge.s32.totalorder %s6735_s0, 2  ;;  %s4168_s3 = sand.u32 1, %s6736_s21  }
0x130c   : > { %p6738_p3 = scmp.ne.s32.totalorder %s6737_s29, 0  ;;  %s4169_s1 = scalar_lea.sflag [#allocation4], %s4168_s3 }
0x130e   : > { %p4834_p4 = pnand %p4865_p2, %p6738_p3 }
0x1310   : > { %5453 = dma.done.wait (!%p4834_p4), %s4169_s1, 128  }
0x1311   : > { %5455 = vsyncadd (!%p4834_p4), %s4169_s1, 4294967168  ;;  %s6739_s30 = sld [smem:[#allocation39_spill]]  ;;  %s6740_s8 = sld [smem:[#allocation36_spill]] }
0x1312   : > { %s6741_s5 = sld [smem:[#allocation37_spill]]  ;;  %s6742_s9 = sld [smem:[#allocation40_spill]] }
0x1317   : > { %p46_p7 = scmp.ge.s32.totalorder %s6739_s30, 4  }
0x1319   :  { %48 = sbr.rel (!%p46_p7) target bundleno = 31 (0x1f), region = 227 }
0x1320   :  { %4174 = vsyncpa [#allocation3], 1 }
0x1321   :  { %4176 = vsyncpa [#allocation3 + $0x1], 1 }
0x1322   :  { %4177 = vsyncpa [#allocation6], 1 }
0x1323   :  { %4178 = vsyncpa [#allocation9], 1 }
0x1324   :  { %4179 = vsyncpa [#allocation12], 1 }
0x1325   :  { %4180 = vsyncpa [#allocation15], 1 }
0x1326   :  { %4181 = vsyncpa [#allocation18], 1 }
0x1327   :  { %4182 = vsyncpa [#allocation21], 1 }
0x1328   :  { %4183 = vsyncpa [#allocation24], 1 }
0x1329   :  { %4184 = vsyncpa [#allocation4], 1 }
0x132a   :  { %4186 = vsyncpa [#allocation4 + $0x1], 1 }

</bundles_post_ra>
